<compile_context>
chip_gen: v7x
topology: tpu7x:2x2x1
jax: 0.10.0
libtpu: 0.0.40
codegen_flags: <defaults>
</compile_context>

<pallas_src>
import functools

import jax
import jax.numpy as jnp
from jax import lax
from jax.experimental import pallas as pl
from jax.experimental.pallas import tpu as pltpu


# -----------------------------------------------------------------------------
# Fused kernel: embedding (one-hot matmul) + 2-layer fused-direction BiLSTM
# (x & y batched together) + masked flat self-attention + max-pool + fc.
# No grid: every operand fits comfortably in VMEM at these shapes.
# -----------------------------------------------------------------------------
def fused_bilstm_kernel(ids_ref, emb_ref, wih1_ref, whh1_ref, b1_ref,
                        wih2_ref, whh2_ref, b2_ref, wfc_ref, bfc_ref, out_ref):
    TB2 = ids_ref.shape[0]            # T * 2B (time-major rows: r = t*B2 + b)
    Vp = emb_ref.shape[0]             # vocab padded to a multiple of 128
    B = out_ref.shape[0]
    B2 = 2 * B                        # x batch rows then y batch rows
    T = TB2 // B2
    H2 = whh1_ref.shape[0]            # 2 * hidden  (fwd | bwd packed along lanes)
    H = H2 // 2
    H8 = 4 * H2                       # 8 * hidden  (4 gates x both directions)
    f32 = jnp.float32

    # Lane mask: within each 2H gate block, first H lanes belong to the fwd direction.
    lane = lax.broadcasted_iota(jnp.int32, (B2, H8), 1)
    fwd_lane = (lane % H2) < H

    def bilstm_layer(gin_all, whh):
        """Fused fwd+bwd LSTM recurrence.

        gin_all: (T*B2, 8H) time-major input projections (+bias) for BOTH directions,
                 gate layout [i_f|i_b|f_f|f_b|g_f|g_b|o_f|o_b] (each block width H).
        whh:     (2H, 8H) block-diagonal packed recurrent weights.
        Returns a list of per-step hidden values, each (B2, 2H) = [h_fwd(k) | h_bwd(T-1-k)].
        """
        h = jnp.zeros((B2, H2), f32)
        c = jnp.zeros((B2, H2), f32)
        outs = [None] * T
        for k in range(T):                                  # static unrolled time loop
            gf = gin_all[k * B2:(k + 1) * B2, :]            # fwd dir consumes time k
            gb = gin_all[(T - 1 - k) * B2:(T - k) * B2, :]  # bwd dir consumes time T-1-k
            g = jnp.where(fwd_lane, gf, gb) + jnp.dot(h, whh, preferred_element_type=f32)
            sg = jax.nn.sigmoid(g)                          # full-width EUP (i, f, o below)
            tg = jnp.tanh(g)                                # full-width EUP (g below)
            i_g = sg[:, 0 * H2:1 * H2]
            f_g = sg[:, 1 * H2:2 * H2]
            g_g = tg[:, 2 * H2:3 * H2]
            o_g = sg[:, 3 * H2:4 * H2]
            c = f_g * c + i_g * g_g
            h = o_g * jnp.tanh(c)
            outs[k] = h
        return outs

    def time_align(outs):
        """(T*B2, 2H) time-major matrix: row t*B2+b = [h_fwd(t, b) | h_bwd(t, b)]."""
        hf = jnp.concatenate([outs[t][:, :H] for t in range(T)], axis=0)
        hb = jnp.concatenate([outs[T - 1 - t][:, H:] for t in range(T)], axis=0)
        return jnp.concatenate([hf, hb], axis=1)

    # ---- embedding gather as a one-hot matmul (no dynamic indexing, no stores) ----
    ids = ids_ref[...]                                                 # (T*B2, 1) int32
    onehot = (lax.broadcasted_iota(jnp.int32, (TB2, Vp), 1) == ids).astype(f32)
    e_all = jnp.dot(onehot, emb_ref[...], preferred_element_type=f32)  # (T*B2, E)

    # ---- layer 1: one batched input projection over all timesteps ----
    gin1 = jnp.dot(e_all, wih1_ref[...], preferred_element_type=f32) + b1_ref[...]
    outs1 = bilstm_layer(gin1, whh1_ref[...])
    # TODO(synk): nn.LSTM inter-layer dropout (p=0.1) applies only in training mode;
    # the eval-mode forward has no dropout, so it is intentionally omitted.

    # ---- layer 2: time-aligned [fwd|bwd] input, single batched projection ----
    h1_all = time_align(outs1)                                         # (T*B2, 2H)
    gin2 = jnp.dot(h1_all, wih2_ref[...], preferred_element_type=f32) + b2_ref[...]
    outs2 = bilstm_layer(gin2, whh2_ref[...])

    # ---- self-attention softmax(h h^T) h on flat (time,batch) rows with a
    #      cross-batch mask, so x and y share two matmuls ----
    h2_all = time_align(outs2)                                         # (T*B2, 2H)
    s = jnp.einsum('td,sd->ts', h2_all, h2_all, preferred_element_type=f32)
    rb = lax.broadcasted_iota(jnp.int32, (TB2, TB2), 0) % B2
    cb = lax.broadcasted_iota(jnp.int32, (TB2, TB2), 1) % B2
    s = jnp.where(rb == cb, s, f32(-1e30))                # kill cross-batch pairs
    m = jnp.max(s, axis=-1, keepdims=True)
    p = jnp.exp(s - m)
    p = p / jnp.sum(p, axis=-1, keepdims=True)            # softmax(dim=-1) per (b, t)
    o = jnp.dot(p, h2_all, preferred_element_type=f32)    # (T*B2, 2H)

    # ---- max over time, concat x|y features, final fc (one MXU pass) ----
    z = functools.reduce(jnp.maximum,
                         [o[k * B2:(k + 1) * B2, :] for k in range(T)])  # (B2, 2H)
    fc_in = jnp.concatenate([z[:B], z[B:]], axis=1)       # (B, 4H) = [x_f|x_b|y_f|y_b]
    out_ref[...] = jnp.dot(fc_in, wfc_ref[...], preferred_element_type=f32) + bfc_ref[...]


# -----------------------------------------------------------------------------
# Wrapper: the only remaining XLA glue is tiny int32 id reshaping.
# -----------------------------------------------------------------------------
def bilstm_model_forward(params, x_ids, y_ids):
    B, T = x_ids.shape
    ids_tm = jnp.transpose(jnp.concatenate([x_ids, y_ids], axis=0))     # (T, 2B) time-major
    ids_col = ids_tm.reshape(T * 2 * B, 1).astype(jnp.int32)            # (T*2B, 1)
    vmem = lambda: pl.BlockSpec(memory_space=pltpu.MemorySpace.VMEM)
    return pl.pallas_call(
        fused_bilstm_kernel,
        out_shape=jax.ShapeDtypeStruct((B, 3), jnp.float32),
        in_specs=[vmem() for _ in range(10)],
        out_specs=vmem(),
    )(ids_col, params['embed'], params['wih1'], params['whh1'], params['b1'],
      params['wih2'], params['whh2'], params['b2'], params['wfc_t'], params['bfc'])


# -----------------------------------------------------------------------------
# Deterministic parameter init (PyTorch-shaped weights, repacked for the kernel):
#   embed:  (vocab padded to 128k, E)
#   wih{l}: (Din, 8H)  columns per gate interleaved by direction [i_f|i_b|f_f|f_b|g_f|g_b|o_f|o_b]
#   whh{l}: (2H, 8H)   block-diagonal: rows [:H] fwd-hidden -> fwd gate cols, rows [H:] bwd -> bwd cols
#   b{l}:   (1, 8H)    b_ih + b_hh, same column layout
#   wfc_t:  (4H, 3) = fc.weight^T ; bfc: (1, 3)
# -----------------------------------------------------------------------------
def init_params(key, vocab_size, embed_dim, hidden_dim):
    keys = iter(jax.random.split(key, 64))

    def rnd(shape, scale=0.1):
        return scale * jax.random.normal(next(keys), shape, dtype=jnp.float32)

    H = hidden_dim
    vp = ((vocab_size + 127) // 128) * 128                 # pad vocab for the one-hot matmul
    emb = rnd((vocab_size, embed_dim), 1.0)
    params = {'embed': jnp.zeros((vp, embed_dim), jnp.float32).at[:vocab_size].set(emb)}

    in_dims = [embed_dim, 2 * H]
    for layer in (1, 2):
        d_in = in_dims[layer - 1]
        wih_dir, whh_dir, b_dir = [], [], []
        for _direction in range(2):                        # forward, then backward
            w_ih = rnd((4 * H, d_in))                      # nn.LSTM weight_ih (gates i,f,g,o)
            w_hh = rnd((4 * H, H))                         # nn.LSTM weight_hh
            b_ih = rnd((4 * H,))
            b_hh = rnd((4 * H,))
            wih_dir.append(jnp.transpose(w_ih))            # (d_in, 4H)
            whh_dir.append(jnp.transpose(w_hh))            # (H, 4H)
            b_dir.append(b_ih + b_hh)                      # (4H,)

        wih_cols, b_cols = [], []
        whh = jnp.zeros((2 * H, 8 * H), jnp.float32)
        for gate in range(4):
            sl = slice(gate * H, (gate + 1) * H)
            wih_cols += [wih_dir[0][:, sl], wih_dir[1][:, sl]]
            b_cols += [b_dir[0][sl], b_dir[1][sl]]
            whh = whh.at[:H, gate * 2 * H:gate * 2 * H + H].set(whh_dir[0][:, sl])
            whh = whh.at[H:, gate * 2 * H + H:(gate + 1) * 2 * H].set(whh_dir[1][:, sl])
        params[f'wih{layer}'] = jnp.concatenate(wih_cols, axis=1)               # (d_in, 8H)
        params[f'b{layer}'] = jnp.concatenate(b_cols, axis=0).reshape(1, 8 * H)  # (1, 8H)
        params[f'whh{layer}'] = whh                                              # (2H, 8H)

    fc_w = rnd((3, 4 * H))                                 # nn.Linear(4H, 3)
    fc_b = rnd((3,))
    params['wfc_t'] = jnp.transpose(fc_w)                  # (4H, 3)
    params['bfc'] = fc_b.reshape(1, 3)
    return params


if __name__ == "__main__":
    VOCAB, EMBED, HIDDEN = 100, 32, 32
    B, T = 2, 8

    key = jax.random.PRNGKey(0)
    kp, kx, ky = jax.random.split(key, 3)
    params = init_params(kp, VOCAB, EMBED, HIDDEN)
    x_ids = jax.random.randint(kx, (B, T), 0, VOCAB, dtype=jnp.int32)
    y_ids = jax.random.randint(ky, (B, T), 0, VOCAB, dtype=jnp.int32)

    out = jax.jit(bilstm_model_forward)(params, x_ids, y_ids)
    out = jax.block_until_ready(out)
    assert out.shape == (B, 3) and out.dtype == jnp.float32
    print("KERNEL_OK")
</pallas_src>

<mosaic_0001>
module attributes {stable_mosaic.version = 11 : i64} {
  func.func @fused_bilstm_kernel(%arg0: memref<32x1xi32, #tpu.memory_space<vmem>>, %arg1: memref<128x32xf32, #tpu.memory_space<vmem>>, %arg2: memref<32x256xf32, #tpu.memory_space<vmem>>, %arg3: memref<64x256xf32, #tpu.memory_space<vmem>>, %arg4: memref<1x256xf32, #tpu.memory_space<vmem>>, %arg5: memref<64x256xf32, #tpu.memory_space<vmem>>, %arg6: memref<64x256xf32, #tpu.memory_space<vmem>>, %arg7: memref<1x256xf32, #tpu.memory_space<vmem>>, %arg8: memref<128x3xf32, #tpu.memory_space<vmem>>, %arg9: memref<1x3xf32, #tpu.memory_space<vmem>>, %arg10: memref<2x3xf32, #tpu.memory_space<vmem>>) attributes {dimension_semantics = [], scalar_prefetch = 0 : i64, scratch_operands = 0 : i64, tpu.core_type = #tpu.core_type<tc>} {
    %0 = tpu.iota {dimensions = array<i32: 1>} : vector<4x256xi32>
    %c64_i32 = arith.constant 64 : i32
    %c0_i32 = arith.constant 0 : i32
    %1 = arith.cmpi eq, %c64_i32, %c0_i32 : i32
    %c1_i32 = arith.constant 1 : i32
    %2 = arith.select %1, %c1_i32, %c64_i32 : i32
    %3 = vector.broadcast %2 : i32 to vector<4x256xi32>
    %4 = arith.remsi %0, %3 : vector<4x256xi32>
    %c0_i32_0 = arith.constant 0 : i32
    %5 = vector.broadcast %c0_i32_0 : i32 to vector<4x256xi32>
    %6 = arith.cmpi ne, %4, %5 : vector<4x256xi32>
    %c0_i32_1 = arith.constant 0 : i32
    %7 = vector.broadcast %c0_i32_1 : i32 to vector<4x256xi32>
    %8 = arith.cmpi slt, %4, %7 : vector<4x256xi32>
    %c0_i32_2 = arith.constant 0 : i32
    %9 = arith.cmpi slt, %2, %c0_i32_2 : i32
    %10 = vector.broadcast %9 : i1 to vector<4x256xi1>
    %11 = vector.broadcast %10 : vector<4x256xi1> to vector<4x256xi1>
    %12 = arith.xori %8, %11 : vector<4x256xi1>
    %13 = arith.andi %12, %6 : vector<4x256xi1>
    %14 = vector.broadcast %2 : i32 to vector<4x256xi32>
    %15 = arith.addi %4, %14 : vector<4x256xi32>
    %16 = arith.select %13, %15, %4 : vector<4x256xi1>, vector<4x256xi32>
    %c32_i32 = arith.constant 32 : i32
    %17 = vector.broadcast %c32_i32 : i32 to vector<4x256xi32>
    %18 = arith.cmpi slt, %16, %17 : vector<4x256xi32>
    %c0 = arith.constant 0 : index
    %c0_3 = arith.constant 0 : index
    %19 = vector.load %arg0[%c0, %c0_3] : memref<32x1xi32, #tpu.memory_space<vmem>>, vector<32x1xi32>
    %20 = tpu.iota {dimensions = array<i32: 1>} : vector<32x128xi32>
    %21 = vector.broadcast %19 : vector<32x1xi32> to vector<32x128xi32>
    %22 = arith.cmpi eq, %20, %21 : vector<32x128xi32>
    %23 = arith.extui %22 : vector<32x128xi1> to vector<32x128xi32>
    %24 = arith.sitofp %23 : vector<32x128xi32> to vector<32x128xf32>
    %c0_4 = arith.constant 0 : index
    %c0_5 = arith.constant 0 : index
    %25 = vector.load %arg1[%c0_4, %c0_5] : memref<128x32xf32, #tpu.memory_space<vmem>>, vector<128x32xf32>
    %cst = arith.constant dense<0.000000e+00> : vector<32x32xf32>
    %26 = tpu.matmul %24, %25, %cst {dimension_numbers = #tpu.dot_dimension_numbers<[1], [0], [0], [1], [0, 0, 1, 1], [], []>} : vector<32x128xf32>, vector<128x32xf32>, vector<32x32xf32> -> vector<32x32xf32>
    %c0_6 = arith.constant 0 : index
    %c0_7 = arith.constant 0 : index
    %27 = vector.load %arg2[%c0_6, %c0_7] : memref<32x256xf32, #tpu.memory_space<vmem>>, vector<32x256xf32>
    %cst_8 = arith.constant dense<0.000000e+00> : vector<32x256xf32>
    %28 = tpu.matmul %26, %27, %cst_8 {dimension_numbers = #tpu.dot_dimension_numbers<[1], [0], [0], [1], [0, 0, 1, 1], [], []>} : vector<32x32xf32>, vector<32x256xf32>, vector<32x256xf32> -> vector<32x256xf32>
    %c0_9 = arith.constant 0 : index
    %c0_10 = arith.constant 0 : index
    %29 = vector.load %arg4[%c0_9, %c0_10] : memref<1x256xf32, #tpu.memory_space<vmem>>, vector<1x256xf32>
    %30 = vector.broadcast %29 : vector<1x256xf32> to vector<32x256xf32>
    %31 = arith.addf %28, %30 : vector<32x256xf32>
    %c0_11 = arith.constant 0 : index
    %c0_12 = arith.constant 0 : index
    %32 = vector.load %arg3[%c0_11, %c0_12] : memref<64x256xf32, #tpu.memory_space<vmem>>, vector<64x256xf32>
    %cst_13 = arith.constant 0.000000e+00 : f32
    %33 = vector.broadcast %cst_13 : f32 to vector<4x64xf32>
    %cst_14 = arith.constant 0.000000e+00 : f32
    %34 = vector.broadcast %cst_14 : f32 to vector<4x64xf32>
    %35 = vector.extract_strided_slice %31 {offsets = [0, 0], sizes = [4, 256], strides = [1, 1]} : vector<32x256xf32> to vector<4x256xf32>
    %36 = vector.extract_strided_slice %31 {offsets = [28, 0], sizes = [4, 256], strides = [1, 1]} : vector<32x256xf32> to vector<4x256xf32>
    %37 = arith.select %18, %35, %36 : vector<4x256xi1>, vector<4x256xf32>
    %cst_15 = arith.constant dense<0.000000e+00> : vector<4x256xf32>
    %38 = tpu.matmul %33, %32, %cst_15 {dimension_numbers = #tpu.dot_dimension_numbers<[1], [0], [0], [1], [0, 0, 1, 1], [], []>} : vector<4x64xf32>, vector<64x256xf32>, vector<4x256xf32> -> vector<4x256xf32>
    %39 = arith.addf %37, %38 : vector<4x256xf32>
    %40 = arith.negf %39 : vector<4x256xf32>
    %41 = math.exp %40 : vector<4x256xf32>
    %cst_16 = arith.constant 1.000000e+00 : f32
    %42 = vector.broadcast %cst_16 : f32 to vector<4x256xf32>
    %43 = arith.addf %42, %41 : vector<4x256xf32>
    %44 = arith.divf %42, %43 : vector<4x256xf32>
    %45 = math.tanh %39 : vector<4x256xf32>
    %46 = vector.extract_strided_slice %44 {offsets = [0, 0], sizes = [4, 64], strides = [1, 1]} : vector<4x256xf32> to vector<4x64xf32>
    %47 = vector.extract_strided_slice %44 {offsets = [0, 64], sizes = [4, 64], strides = [1, 1]} : vector<4x256xf32> to vector<4x64xf32>
    %48 = vector.extract_strided_slice %45 {offsets = [0, 128], sizes = [4, 64], strides = [1, 1]} : vector<4x256xf32> to vector<4x64xf32>
    %49 = vector.extract_strided_slice %44 {offsets = [0, 192], sizes = [4, 64], strides = [1, 1]} : vector<4x256xf32> to vector<4x64xf32>
    %50 = arith.mulf %47, %34 : vector<4x64xf32>
    %51 = arith.mulf %46, %48 : vector<4x64xf32>
    %52 = arith.addf %50, %51 : vector<4x64xf32>
    %53 = math.tanh %52 : vector<4x64xf32>
    %54 = arith.mulf %49, %53 : vector<4x64xf32>
    %55 = vector.extract_strided_slice %31 {offsets = [4, 0], sizes = [4, 256], strides = [1, 1]} : vector<32x256xf32> to vector<4x256xf32>
    %56 = vector.extract_strided_slice %31 {offsets = [24, 0], sizes = [4, 256], strides = [1, 1]} : vector<32x256xf32> to vector<4x256xf32>
    %57 = arith.select %18, %55, %56 : vector<4x256xi1>, vector<4x256xf32>
    %cst_17 = arith.constant dense<0.000000e+00> : vector<4x256xf32>
    %58 = tpu.matmul %54, %32, %cst_17 {dimension_numbers = #tpu.dot_dimension_numbers<[1], [0], [0], [1], [0, 0, 1, 1], [], []>} : vector<4x64xf32>, vector<64x256xf32>, vector<4x256xf32> -> vector<4x256xf32>
    %59 = arith.addf %57, %58 : vector<4x256xf32>
    %60 = arith.negf %59 : vector<4x256xf32>
    %61 = math.exp %60 : vector<4x256xf32>
    %cst_18 = arith.constant 1.000000e+00 : f32
    %62 = vector.broadcast %cst_18 : f32 to vector<4x256xf32>
    %63 = arith.addf %62, %61 : vector<4x256xf32>
    %64 = arith.divf %62, %63 : vector<4x256xf32>
    %65 = math.tanh %59 : vector<4x256xf32>
    %66 = vector.extract_strided_slice %64 {offsets = [0, 0], sizes = [4, 64], strides = [1, 1]} : vector<4x256xf32> to vector<4x64xf32>
    %67 = vector.extract_strided_slice %64 {offsets = [0, 64], sizes = [4, 64], strides = [1, 1]} : vector<4x256xf32> to vector<4x64xf32>
    %68 = vector.extract_strided_slice %65 {offsets = [0, 128], sizes = [4, 64], strides = [1, 1]} : vector<4x256xf32> to vector<4x64xf32>
    %69 = vector.extract_strided_slice %64 {offsets = [0, 192], sizes = [4, 64], strides = [1, 1]} : vector<4x256xf32> to vector<4x64xf32>
    %70 = arith.mulf %67, %52 : vector<4x64xf32>
    %71 = arith.mulf %66, %68 : vector<4x64xf32>
    %72 = arith.addf %70, %71 : vector<4x64xf32>
    %73 = math.tanh %72 : vector<4x64xf32>
    %74 = arith.mulf %69, %73 : vector<4x64xf32>
    %75 = vector.extract_strided_slice %31 {offsets = [8, 0], sizes = [4, 256], strides = [1, 1]} : vector<32x256xf32> to vector<4x256xf32>
    %76 = vector.extract_strided_slice %31 {offsets = [20, 0], sizes = [4, 256], strides = [1, 1]} : vector<32x256xf32> to vector<4x256xf32>
    %77 = arith.select %18, %75, %76 : vector<4x256xi1>, vector<4x256xf32>
    %cst_19 = arith.constant dense<0.000000e+00> : vector<4x256xf32>
    %78 = tpu.matmul %74, %32, %cst_19 {dimension_numbers = #tpu.dot_dimension_numbers<[1], [0], [0], [1], [0, 0, 1, 1], [], []>} : vector<4x64xf32>, vector<64x256xf32>, vector<4x256xf32> -> vector<4x256xf32>
    %79 = arith.addf %77, %78 : vector<4x256xf32>
    %80 = arith.negf %79 : vector<4x256xf32>
    %81 = math.exp %80 : vector<4x256xf32>
    %cst_20 = arith.constant 1.000000e+00 : f32
    %82 = vector.broadcast %cst_20 : f32 to vector<4x256xf32>
    %83 = arith.addf %82, %81 : vector<4x256xf32>
    %84 = arith.divf %82, %83 : vector<4x256xf32>
    %85 = math.tanh %79 : vector<4x256xf32>
    %86 = vector.extract_strided_slice %84 {offsets = [0, 0], sizes = [4, 64], strides = [1, 1]} : vector<4x256xf32> to vector<4x64xf32>
    %87 = vector.extract_strided_slice %84 {offsets = [0, 64], sizes = [4, 64], strides = [1, 1]} : vector<4x256xf32> to vector<4x64xf32>
    %88 = vector.extract_strided_slice %85 {offsets = [0, 128], sizes = [4, 64], strides = [1, 1]} : vector<4x256xf32> to vector<4x64xf32>
    %89 = vector.extract_strided_slice %84 {offsets = [0, 192], sizes = [4, 64], strides = [1, 1]} : vector<4x256xf32> to vector<4x64xf32>
    %90 = arith.mulf %87, %72 : vector<4x64xf32>
    %91 = arith.mulf %86, %88 : vector<4x64xf32>
    %92 = arith.addf %90, %91 : vector<4x64xf32>
    %93 = math.tanh %92 : vector<4x64xf32>
    %94 = arith.mulf %89, %93 : vector<4x64xf32>
    %95 = vector.extract_strided_slice %31 {offsets = [12, 0], sizes = [4, 256], strides = [1, 1]} : vector<32x256xf32> to vector<4x256xf32>
    %96 = vector.extract_strided_slice %31 {offsets = [16, 0], sizes = [4, 256], strides = [1, 1]} : vector<32x256xf32> to vector<4x256xf32>
    %97 = arith.select %18, %95, %96 : vector<4x256xi1>, vector<4x256xf32>
    %cst_21 = arith.constant dense<0.000000e+00> : vector<4x256xf32>
    %98 = tpu.matmul %94, %32, %cst_21 {dimension_numbers = #tpu.dot_dimension_numbers<[1], [0], [0], [1], [0, 0, 1, 1], [], []>} : vector<4x64xf32>, vector<64x256xf32>, vector<4x256xf32> -> vector<4x256xf32>
    %99 = arith.addf %97, %98 : vector<4x256xf32>
    %100 = arith.negf %99 : vector<4x256xf32>
    %101 = math.exp %100 : vector<4x256xf32>
    %cst_22 = arith.constant 1.000000e+00 : f32
    %102 = vector.broadcast %cst_22 : f32 to vector<4x256xf32>
    %103 = arith.addf %102, %101 : vector<4x256xf32>
    %104 = arith.divf %102, %103 : vector<4x256xf32>
    %105 = math.tanh %99 : vector<4x256xf32>
    %106 = vector.extract_strided_slice %104 {offsets = [0, 0], sizes = [4, 64], strides = [1, 1]} : vector<4x256xf32> to vector<4x64xf32>
    %107 = vector.extract_strided_slice %104 {offsets = [0, 64], sizes = [4, 64], strides = [1, 1]} : vector<4x256xf32> to vector<4x64xf32>
    %108 = vector.extract_strided_slice %105 {offsets = [0, 128], sizes = [4, 64], strides = [1, 1]} : vector<4x256xf32> to vector<4x64xf32>
    %109 = vector.extract_strided_slice %104 {offsets = [0, 192], sizes = [4, 64], strides = [1, 1]} : vector<4x256xf32> to vector<4x64xf32>
    %110 = arith.mulf %107, %92 : vector<4x64xf32>
    %111 = arith.mulf %106, %108 : vector<4x64xf32>
    %112 = arith.addf %110, %111 : vector<4x64xf32>
    %113 = math.tanh %112 : vector<4x64xf32>
    %114 = arith.mulf %109, %113 : vector<4x64xf32>
    %115 = vector.extract_strided_slice %31 {offsets = [16, 0], sizes = [4, 256], strides = [1, 1]} : vector<32x256xf32> to vector<4x256xf32>
    %116 = vector.extract_strided_slice %31 {offsets = [12, 0], sizes = [4, 256], strides = [1, 1]} : vector<32x256xf32> to vector<4x256xf32>
    %117 = arith.select %18, %115, %116 : vector<4x256xi1>, vector<4x256xf32>
    %cst_23 = arith.constant dense<0.000000e+00> : vector<4x256xf32>
    %118 = tpu.matmul %114, %32, %cst_23 {dimension_numbers = #tpu.dot_dimension_numbers<[1], [0], [0], [1], [0, 0, 1, 1], [], []>} : vector<4x64xf32>, vector<64x256xf32>, vector<4x256xf32> -> vector<4x256xf32>
    %119 = arith.addf %117, %118 : vector<4x256xf32>
    %120 = arith.negf %119 : vector<4x256xf32>
    %121 = math.exp %120 : vector<4x256xf32>
    %cst_24 = arith.constant 1.000000e+00 : f32
    %122 = vector.broadcast %cst_24 : f32 to vector<4x256xf32>
    %123 = arith.addf %122, %121 : vector<4x256xf32>
    %124 = arith.divf %122, %123 : vector<4x256xf32>
    %125 = math.tanh %119 : vector<4x256xf32>
    %126 = vector.extract_strided_slice %124 {offsets = [0, 0], sizes = [4, 64], strides = [1, 1]} : vector<4x256xf32> to vector<4x64xf32>
    %127 = vector.extract_strided_slice %124 {offsets = [0, 64], sizes = [4, 64], strides = [1, 1]} : vector<4x256xf32> to vector<4x64xf32>
    %128 = vector.extract_strided_slice %125 {offsets = [0, 128], sizes = [4, 64], strides = [1, 1]} : vector<4x256xf32> to vector<4x64xf32>
    %129 = vector.extract_strided_slice %124 {offsets = [0, 192], sizes = [4, 64], strides = [1, 1]} : vector<4x256xf32> to vector<4x64xf32>
    %130 = arith.mulf %127, %112 : vector<4x64xf32>
    %131 = arith.mulf %126, %128 : vector<4x64xf32>
    %132 = arith.addf %130, %131 : vector<4x64xf32>
    %133 = math.tanh %132 : vector<4x64xf32>
    %134 = arith.mulf %129, %133 : vector<4x64xf32>
    %135 = vector.extract_strided_slice %31 {offsets = [20, 0], sizes = [4, 256], strides = [1, 1]} : vector<32x256xf32> to vector<4x256xf32>
    %136 = vector.extract_strided_slice %31 {offsets = [8, 0], sizes = [4, 256], strides = [1, 1]} : vector<32x256xf32> to vector<4x256xf32>
    %137 = arith.select %18, %135, %136 : vector<4x256xi1>, vector<4x256xf32>
    %cst_25 = arith.constant dense<0.000000e+00> : vector<4x256xf32>
    %138 = tpu.matmul %134, %32, %cst_25 {dimension_numbers = #tpu.dot_dimension_numbers<[1], [0], [0], [1], [0, 0, 1, 1], [], []>} : vector<4x64xf32>, vector<64x256xf32>, vector<4x256xf32> -> vector<4x256xf32>
    %139 = arith.addf %137, %138 : vector<4x256xf32>
    %140 = arith.negf %139 : vector<4x256xf32>
    %141 = math.exp %140 : vector<4x256xf32>
    %cst_26 = arith.constant 1.000000e+00 : f32
    %142 = vector.broadcast %cst_26 : f32 to vector<4x256xf32>
    %143 = arith.addf %142, %141 : vector<4x256xf32>
    %144 = arith.divf %142, %143 : vector<4x256xf32>
    %145 = math.tanh %139 : vector<4x256xf32>
    %146 = vector.extract_strided_slice %144 {offsets = [0, 0], sizes = [4, 64], strides = [1, 1]} : vector<4x256xf32> to vector<4x64xf32>
    %147 = vector.extract_strided_slice %144 {offsets = [0, 64], sizes = [4, 64], strides = [1, 1]} : vector<4x256xf32> to vector<4x64xf32>
    %148 = vector.extract_strided_slice %145 {offsets = [0, 128], sizes = [4, 64], strides = [1, 1]} : vector<4x256xf32> to vector<4x64xf32>
    %149 = vector.extract_strided_slice %144 {offsets = [0, 192], sizes = [4, 64], strides = [1, 1]} : vector<4x256xf32> to vector<4x64xf32>
    %150 = arith.mulf %147, %132 : vector<4x64xf32>
    %151 = arith.mulf %146, %148 : vector<4x64xf32>
    %152 = arith.addf %150, %151 : vector<4x64xf32>
    %153 = math.tanh %152 : vector<4x64xf32>
    %154 = arith.mulf %149, %153 : vector<4x64xf32>
    %155 = vector.extract_strided_slice %31 {offsets = [24, 0], sizes = [4, 256], strides = [1, 1]} : vector<32x256xf32> to vector<4x256xf32>
    %156 = vector.extract_strided_slice %31 {offsets = [4, 0], sizes = [4, 256], strides = [1, 1]} : vector<32x256xf32> to vector<4x256xf32>
    %157 = arith.select %18, %155, %156 : vector<4x256xi1>, vector<4x256xf32>
    %cst_27 = arith.constant dense<0.000000e+00> : vector<4x256xf32>
    %158 = tpu.matmul %154, %32, %cst_27 {dimension_numbers = #tpu.dot_dimension_numbers<[1], [0], [0], [1], [0, 0, 1, 1], [], []>} : vector<4x64xf32>, vector<64x256xf32>, vector<4x256xf32> -> vector<4x256xf32>
    %159 = arith.addf %157, %158 : vector<4x256xf32>
    %160 = arith.negf %159 : vector<4x256xf32>
    %161 = math.exp %160 : vector<4x256xf32>
    %cst_28 = arith.constant 1.000000e+00 : f32
    %162 = vector.broadcast %cst_28 : f32 to vector<4x256xf32>
    %163 = arith.addf %162, %161 : vector<4x256xf32>
    %164 = arith.divf %162, %163 : vector<4x256xf32>
    %165 = math.tanh %159 : vector<4x256xf32>
    %166 = vector.extract_strided_slice %164 {offsets = [0, 0], sizes = [4, 64], strides = [1, 1]} : vector<4x256xf32> to vector<4x64xf32>
    %167 = vector.extract_strided_slice %164 {offsets = [0, 64], sizes = [4, 64], strides = [1, 1]} : vector<4x256xf32> to vector<4x64xf32>
    %168 = vector.extract_strided_slice %165 {offsets = [0, 128], sizes = [4, 64], strides = [1, 1]} : vector<4x256xf32> to vector<4x64xf32>
    %169 = vector.extract_strided_slice %164 {offsets = [0, 192], sizes = [4, 64], strides = [1, 1]} : vector<4x256xf32> to vector<4x64xf32>
    %170 = arith.mulf %167, %152 : vector<4x64xf32>
    %171 = arith.mulf %166, %168 : vector<4x64xf32>
    %172 = arith.addf %170, %171 : vector<4x64xf32>
    %173 = math.tanh %172 : vector<4x64xf32>
    %174 = arith.mulf %169, %173 : vector<4x64xf32>
    %175 = vector.extract_strided_slice %31 {offsets = [28, 0], sizes = [4, 256], strides = [1, 1]} : vector<32x256xf32> to vector<4x256xf32>
    %176 = vector.extract_strided_slice %31 {offsets = [0, 0], sizes = [4, 256], strides = [1, 1]} : vector<32x256xf32> to vector<4x256xf32>
    %177 = arith.select %18, %175, %176 : vector<4x256xi1>, vector<4x256xf32>
    %cst_29 = arith.constant dense<0.000000e+00> : vector<4x256xf32>
    %178 = tpu.matmul %174, %32, %cst_29 {dimension_numbers = #tpu.dot_dimension_numbers<[1], [0], [0], [1], [0, 0, 1, 1], [], []>} : vector<4x64xf32>, vector<64x256xf32>, vector<4x256xf32> -> vector<4x256xf32>
    %179 = arith.addf %177, %178 : vector<4x256xf32>
    %180 = arith.negf %179 : vector<4x256xf32>
    %181 = math.exp %180 : vector<4x256xf32>
    %cst_30 = arith.constant 1.000000e+00 : f32
    %182 = vector.broadcast %cst_30 : f32 to vector<4x256xf32>
    %183 = arith.addf %182, %181 : vector<4x256xf32>
    %184 = arith.divf %182, %183 : vector<4x256xf32>
    %185 = math.tanh %179 : vector<4x256xf32>
    %186 = vector.extract_strided_slice %184 {offsets = [0, 0], sizes = [4, 64], strides = [1, 1]} : vector<4x256xf32> to vector<4x64xf32>
    %187 = vector.extract_strided_slice %184 {offsets = [0, 64], sizes = [4, 64], strides = [1, 1]} : vector<4x256xf32> to vector<4x64xf32>
    %188 = vector.extract_strided_slice %185 {offsets = [0, 128], sizes = [4, 64], strides = [1, 1]} : vector<4x256xf32> to vector<4x64xf32>
    %189 = vector.extract_strided_slice %184 {offsets = [0, 192], sizes = [4, 64], strides = [1, 1]} : vector<4x256xf32> to vector<4x64xf32>
    %190 = arith.mulf %187, %172 : vector<4x64xf32>
    %191 = arith.mulf %186, %188 : vector<4x64xf32>
    %192 = arith.addf %190, %191 : vector<4x64xf32>
    %193 = math.tanh %192 : vector<4x64xf32>
    %194 = arith.mulf %189, %193 : vector<4x64xf32>
    %195 = vector.extract_strided_slice %54 {offsets = [0, 0], sizes = [4, 32], strides = [1, 1]} : vector<4x64xf32> to vector<4x32xf32>
    %196 = vector.extract_strided_slice %74 {offsets = [0, 0], sizes = [4, 32], strides = [1, 1]} : vector<4x64xf32> to vector<4x32xf32>
    %197 = vector.extract_strided_slice %94 {offsets = [0, 0], sizes = [4, 32], strides = [1, 1]} : vector<4x64xf32> to vector<4x32xf32>
    %198 = vector.extract_strided_slice %114 {offsets = [0, 0], sizes = [4, 32], strides = [1, 1]} : vector<4x64xf32> to vector<4x32xf32>
    %199 = vector.extract_strided_slice %134 {offsets = [0, 0], sizes = [4, 32], strides = [1, 1]} : vector<4x64xf32> to vector<4x32xf32>
    %200 = vector.extract_strided_slice %154 {offsets = [0, 0], sizes = [4, 32], strides = [1, 1]} : vector<4x64xf32> to vector<4x32xf32>
    %201 = vector.extract_strided_slice %174 {offsets = [0, 0], sizes = [4, 32], strides = [1, 1]} : vector<4x64xf32> to vector<4x32xf32>
    %202 = vector.extract_strided_slice %194 {offsets = [0, 0], sizes = [4, 32], strides = [1, 1]} : vector<4x64xf32> to vector<4x32xf32>
    %203 = tpu.concatenate %195, %196, %197, %198, %199, %200, %201, %202 in 0 : vector<4x32xf32>, vector<4x32xf32>, vector<4x32xf32>, vector<4x32xf32>, vector<4x32xf32>, vector<4x32xf32>, vector<4x32xf32>, vector<4x32xf32> -> vector<32x32xf32>
    %204 = vector.extract_strided_slice %194 {offsets = [0, 32], sizes = [4, 32], strides = [1, 1]} : vector<4x64xf32> to vector<4x32xf32>
    %205 = vector.extract_strided_slice %174 {offsets = [0, 32], sizes = [4, 32], strides = [1, 1]} : vector<4x64xf32> to vector<4x32xf32>
    %206 = vector.extract_strided_slice %154 {offsets = [0, 32], sizes = [4, 32], strides = [1, 1]} : vector<4x64xf32> to vector<4x32xf32>
    %207 = vector.extract_strided_slice %134 {offsets = [0, 32], sizes = [4, 32], strides = [1, 1]} : vector<4x64xf32> to vector<4x32xf32>
    %208 = vector.extract_strided_slice %114 {offsets = [0, 32], sizes = [4, 32], strides = [1, 1]} : vector<4x64xf32> to vector<4x32xf32>
    %209 = vector.extract_strided_slice %94 {offsets = [0, 32], sizes = [4, 32], strides = [1, 1]} : vector<4x64xf32> to vector<4x32xf32>
    %210 = vector.extract_strided_slice %74 {offsets = [0, 32], sizes = [4, 32], strides = [1, 1]} : vector<4x64xf32> to vector<4x32xf32>
    %211 = vector.extract_strided_slice %54 {offsets = [0, 32], sizes = [4, 32], strides = [1, 1]} : vector<4x64xf32> to vector<4x32xf32>
    %212 = tpu.concatenate %204, %205, %206, %207, %208, %209, %210, %211 in 0 : vector<4x32xf32>, vector<4x32xf32>, vector<4x32xf32>, vector<4x32xf32>, vector<4x32xf32>, vector<4x32xf32>, vector<4x32xf32>, vector<4x32xf32> -> vector<32x32xf32>
    %213 = tpu.concatenate %203, %212 in 1 : vector<32x32xf32>, vector<32x32xf32> -> vector<32x64xf32>
    %c0_31 = arith.constant 0 : index
    %c0_32 = arith.constant 0 : index
    %214 = vector.load %arg5[%c0_31, %c0_32] : memref<64x256xf32, #tpu.memory_space<vmem>>, vector<64x256xf32>
    %cst_33 = arith.constant dense<0.000000e+00> : vector<32x256xf32>
    %215 = tpu.matmul %213, %214, %cst_33 {dimension_numbers = #tpu.dot_dimension_numbers<[1], [0], [0], [1], [0, 0, 1, 1], [], []>} : vector<32x64xf32>, vector<64x256xf32>, vector<32x256xf32> -> vector<32x256xf32>
    %c0_34 = arith.constant 0 : index
    %c0_35 = arith.constant 0 : index
    %216 = vector.load %arg7[%c0_34, %c0_35] : memref<1x256xf32, #tpu.memory_space<vmem>>, vector<1x256xf32>
    %217 = vector.broadcast %216 : vector<1x256xf32> to vector<32x256xf32>
    %218 = arith.addf %215, %217 : vector<32x256xf32>
    %c0_36 = arith.constant 0 : index
    %c0_37 = arith.constant 0 : index
    %219 = vector.load %arg6[%c0_36, %c0_37] : memref<64x256xf32, #tpu.memory_space<vmem>>, vector<64x256xf32>
    %cst_38 = arith.constant 0.000000e+00 : f32
    %220 = vector.broadcast %cst_38 : f32 to vector<4x64xf32>
    %cst_39 = arith.constant 0.000000e+00 : f32
    %221 = vector.broadcast %cst_39 : f32 to vector<4x64xf32>
    %222 = vector.extract_strided_slice %218 {offsets = [0, 0], sizes = [4, 256], strides = [1, 1]} : vector<32x256xf32> to vector<4x256xf32>
    %223 = vector.extract_strided_slice %218 {offsets = [28, 0], sizes = [4, 256], strides = [1, 1]} : vector<32x256xf32> to vector<4x256xf32>
    %224 = arith.select %18, %222, %223 : vector<4x256xi1>, vector<4x256xf32>
    %cst_40 = arith.constant dense<0.000000e+00> : vector<4x256xf32>
    %225 = tpu.matmul %220, %219, %cst_40 {dimension_numbers = #tpu.dot_dimension_numbers<[1], [0], [0], [1], [0, 0, 1, 1], [], []>} : vector<4x64xf32>, vector<64x256xf32>, vector<4x256xf32> -> vector<4x256xf32>
    %226 = arith.addf %224, %225 : vector<4x256xf32>
    %227 = arith.negf %226 : vector<4x256xf32>
    %228 = math.exp %227 : vector<4x256xf32>
    %cst_41 = arith.constant 1.000000e+00 : f32
    %229 = vector.broadcast %cst_41 : f32 to vector<4x256xf32>
    %230 = arith.addf %229, %228 : vector<4x256xf32>
    %231 = arith.divf %229, %230 : vector<4x256xf32>
    %232 = math.tanh %226 : vector<4x256xf32>
    %233 = vector.extract_strided_slice %231 {offsets = [0, 0], sizes = [4, 64], strides = [1, 1]} : vector<4x256xf32> to vector<4x64xf32>
    %234 = vector.extract_strided_slice %231 {offsets = [0, 64], sizes = [4, 64], strides = [1, 1]} : vector<4x256xf32> to vector<4x64xf32>
    %235 = vector.extract_strided_slice %232 {offsets = [0, 128], sizes = [4, 64], strides = [1, 1]} : vector<4x256xf32> to vector<4x64xf32>
    %236 = vector.extract_strided_slice %231 {offsets = [0, 192], sizes = [4, 64], strides = [1, 1]} : vector<4x256xf32> to vector<4x64xf32>
    %237 = arith.mulf %234, %221 : vector<4x64xf32>
    %238 = arith.mulf %233, %235 : vector<4x64xf32>
    %239 = arith.addf %237, %238 : vector<4x64xf32>
    %240 = math.tanh %239 : vector<4x64xf32>
    %241 = arith.mulf %236, %240 : vector<4x64xf32>
    %242 = vector.extract_strided_slice %218 {offsets = [4, 0], sizes = [4, 256], strides = [1, 1]} : vector<32x256xf32> to vector<4x256xf32>
    %243 = vector.extract_strided_slice %218 {offsets = [24, 0], sizes = [4, 256], strides = [1, 1]} : vector<32x256xf32> to vector<4x256xf32>
    %244 = arith.select %18, %242, %243 : vector<4x256xi1>, vector<4x256xf32>
    %cst_42 = arith.constant dense<0.000000e+00> : vector<4x256xf32>
    %245 = tpu.matmul %241, %219, %cst_42 {dimension_numbers = #tpu.dot_dimension_numbers<[1], [0], [0], [1], [0, 0, 1, 1], [], []>} : vector<4x64xf32>, vector<64x256xf32>, vector<4x256xf32> -> vector<4x256xf32>
    %246 = arith.addf %244, %245 : vector<4x256xf32>
    %247 = arith.negf %246 : vector<4x256xf32>
    %248 = math.exp %247 : vector<4x256xf32>
    %cst_43 = arith.constant 1.000000e+00 : f32
    %249 = vector.broadcast %cst_43 : f32 to vector<4x256xf32>
    %250 = arith.addf %249, %248 : vector<4x256xf32>
    %251 = arith.divf %249, %250 : vector<4x256xf32>
    %252 = math.tanh %246 : vector<4x256xf32>
    %253 = vector.extract_strided_slice %251 {offsets = [0, 0], sizes = [4, 64], strides = [1, 1]} : vector<4x256xf32> to vector<4x64xf32>
    %254 = vector.extract_strided_slice %251 {offsets = [0, 64], sizes = [4, 64], strides = [1, 1]} : vector<4x256xf32> to vector<4x64xf32>
    %255 = vector.extract_strided_slice %252 {offsets = [0, 128], sizes = [4, 64], strides = [1, 1]} : vector<4x256xf32> to vector<4x64xf32>
    %256 = vector.extract_strided_slice %251 {offsets = [0, 192], sizes = [4, 64], strides = [1, 1]} : vector<4x256xf32> to vector<4x64xf32>
    %257 = arith.mulf %254, %239 : vector<4x64xf32>
    %258 = arith.mulf %253, %255 : vector<4x64xf32>
    %259 = arith.addf %257, %258 : vector<4x64xf32>
    %260 = math.tanh %259 : vector<4x64xf32>
    %261 = arith.mulf %256, %260 : vector<4x64xf32>
    %262 = vector.extract_strided_slice %218 {offsets = [8, 0], sizes = [4, 256], strides = [1, 1]} : vector<32x256xf32> to vector<4x256xf32>
    %263 = vector.extract_strided_slice %218 {offsets = [20, 0], sizes = [4, 256], strides = [1, 1]} : vector<32x256xf32> to vector<4x256xf32>
    %264 = arith.select %18, %262, %263 : vector<4x256xi1>, vector<4x256xf32>
    %cst_44 = arith.constant dense<0.000000e+00> : vector<4x256xf32>
    %265 = tpu.matmul %261, %219, %cst_44 {dimension_numbers = #tpu.dot_dimension_numbers<[1], [0], [0], [1], [0, 0, 1, 1], [], []>} : vector<4x64xf32>, vector<64x256xf32>, vector<4x256xf32> -> vector<4x256xf32>
    %266 = arith.addf %264, %265 : vector<4x256xf32>
    %267 = arith.negf %266 : vector<4x256xf32>
    %268 = math.exp %267 : vector<4x256xf32>
    %cst_45 = arith.constant 1.000000e+00 : f32
    %269 = vector.broadcast %cst_45 : f32 to vector<4x256xf32>
    %270 = arith.addf %269, %268 : vector<4x256xf32>
    %271 = arith.divf %269, %270 : vector<4x256xf32>
    %272 = math.tanh %266 : vector<4x256xf32>
    %273 = vector.extract_strided_slice %271 {offsets = [0, 0], sizes = [4, 64], strides = [1, 1]} : vector<4x256xf32> to vector<4x64xf32>
    %274 = vector.extract_strided_slice %271 {offsets = [0, 64], sizes = [4, 64], strides = [1, 1]} : vector<4x256xf32> to vector<4x64xf32>
    %275 = vector.extract_strided_slice %272 {offsets = [0, 128], sizes = [4, 64], strides = [1, 1]} : vector<4x256xf32> to vector<4x64xf32>
    %276 = vector.extract_strided_slice %271 {offsets = [0, 192], sizes = [4, 64], strides = [1, 1]} : vector<4x256xf32> to vector<4x64xf32>
    %277 = arith.mulf %274, %259 : vector<4x64xf32>
    %278 = arith.mulf %273, %275 : vector<4x64xf32>
    %279 = arith.addf %277, %278 : vector<4x64xf32>
    %280 = math.tanh %279 : vector<4x64xf32>
    %281 = arith.mulf %276, %280 : vector<4x64xf32>
    %282 = vector.extract_strided_slice %218 {offsets = [12, 0], sizes = [4, 256], strides = [1, 1]} : vector<32x256xf32> to vector<4x256xf32>
    %283 = vector.extract_strided_slice %218 {offsets = [16, 0], sizes = [4, 256], strides = [1, 1]} : vector<32x256xf32> to vector<4x256xf32>
    %284 = arith.select %18, %282, %283 : vector<4x256xi1>, vector<4x256xf32>
    %cst_46 = arith.constant dense<0.000000e+00> : vector<4x256xf32>
    %285 = tpu.matmul %281, %219, %cst_46 {dimension_numbers = #tpu.dot_dimension_numbers<[1], [0], [0], [1], [0, 0, 1, 1], [], []>} : vector<4x64xf32>, vector<64x256xf32>, vector<4x256xf32> -> vector<4x256xf32>
    %286 = arith.addf %284, %285 : vector<4x256xf32>
    %287 = arith.negf %286 : vector<4x256xf32>
    %288 = math.exp %287 : vector<4x256xf32>
    %cst_47 = arith.constant 1.000000e+00 : f32
    %289 = vector.broadcast %cst_47 : f32 to vector<4x256xf32>
    %290 = arith.addf %289, %288 : vector<4x256xf32>
    %291 = arith.divf %289, %290 : vector<4x256xf32>
    %292 = math.tanh %286 : vector<4x256xf32>
    %293 = vector.extract_strided_slice %291 {offsets = [0, 0], sizes = [4, 64], strides = [1, 1]} : vector<4x256xf32> to vector<4x64xf32>
    %294 = vector.extract_strided_slice %291 {offsets = [0, 64], sizes = [4, 64], strides = [1, 1]} : vector<4x256xf32> to vector<4x64xf32>
    %295 = vector.extract_strided_slice %292 {offsets = [0, 128], sizes = [4, 64], strides = [1, 1]} : vector<4x256xf32> to vector<4x64xf32>
    %296 = vector.extract_strided_slice %291 {offsets = [0, 192], sizes = [4, 64], strides = [1, 1]} : vector<4x256xf32> to vector<4x64xf32>
    %297 = arith.mulf %294, %279 : vector<4x64xf32>
    %298 = arith.mulf %293, %295 : vector<4x64xf32>
    %299 = arith.addf %297, %298 : vector<4x64xf32>
    %300 = math.tanh %299 : vector<4x64xf32>
    %301 = arith.mulf %296, %300 : vector<4x64xf32>
    %302 = vector.extract_strided_slice %218 {offsets = [16, 0], sizes = [4, 256], strides = [1, 1]} : vector<32x256xf32> to vector<4x256xf32>
    %303 = vector.extract_strided_slice %218 {offsets = [12, 0], sizes = [4, 256], strides = [1, 1]} : vector<32x256xf32> to vector<4x256xf32>
    %304 = arith.select %18, %302, %303 : vector<4x256xi1>, vector<4x256xf32>
    %cst_48 = arith.constant dense<0.000000e+00> : vector<4x256xf32>
    %305 = tpu.matmul %301, %219, %cst_48 {dimension_numbers = #tpu.dot_dimension_numbers<[1], [0], [0], [1], [0, 0, 1, 1], [], []>} : vector<4x64xf32>, vector<64x256xf32>, vector<4x256xf32> -> vector<4x256xf32>
    %306 = arith.addf %304, %305 : vector<4x256xf32>
    %307 = arith.negf %306 : vector<4x256xf32>
    %308 = math.exp %307 : vector<4x256xf32>
    %cst_49 = arith.constant 1.000000e+00 : f32
    %309 = vector.broadcast %cst_49 : f32 to vector<4x256xf32>
    %310 = arith.addf %309, %308 : vector<4x256xf32>
    %311 = arith.divf %309, %310 : vector<4x256xf32>
    %312 = math.tanh %306 : vector<4x256xf32>
    %313 = vector.extract_strided_slice %311 {offsets = [0, 0], sizes = [4, 64], strides = [1, 1]} : vector<4x256xf32> to vector<4x64xf32>
    %314 = vector.extract_strided_slice %311 {offsets = [0, 64], sizes = [4, 64], strides = [1, 1]} : vector<4x256xf32> to vector<4x64xf32>
    %315 = vector.extract_strided_slice %312 {offsets = [0, 128], sizes = [4, 64], strides = [1, 1]} : vector<4x256xf32> to vector<4x64xf32>
    %316 = vector.extract_strided_slice %311 {offsets = [0, 192], sizes = [4, 64], strides = [1, 1]} : vector<4x256xf32> to vector<4x64xf32>
    %317 = arith.mulf %314, %299 : vector<4x64xf32>
    %318 = arith.mulf %313, %315 : vector<4x64xf32>
    %319 = arith.addf %317, %318 : vector<4x64xf32>
    %320 = math.tanh %319 : vector<4x64xf32>
    %321 = arith.mulf %316, %320 : vector<4x64xf32>
    %322 = vector.extract_strided_slice %218 {offsets = [20, 0], sizes = [4, 256], strides = [1, 1]} : vector<32x256xf32> to vector<4x256xf32>
    %323 = vector.extract_strided_slice %218 {offsets = [8, 0], sizes = [4, 256], strides = [1, 1]} : vector<32x256xf32> to vector<4x256xf32>
    %324 = arith.select %18, %322, %323 : vector<4x256xi1>, vector<4x256xf32>
    %cst_50 = arith.constant dense<0.000000e+00> : vector<4x256xf32>
    %325 = tpu.matmul %321, %219, %cst_50 {dimension_numbers = #tpu.dot_dimension_numbers<[1], [0], [0], [1], [0, 0, 1, 1], [], []>} : vector<4x64xf32>, vector<64x256xf32>, vector<4x256xf32> -> vector<4x256xf32>
    %326 = arith.addf %324, %325 : vector<4x256xf32>
    %327 = arith.negf %326 : vector<4x256xf32>
    %328 = math.exp %327 : vector<4x256xf32>
    %cst_51 = arith.constant 1.000000e+00 : f32
    %329 = vector.broadcast %cst_51 : f32 to vector<4x256xf32>
    %330 = arith.addf %329, %328 : vector<4x256xf32>
    %331 = arith.divf %329, %330 : vector<4x256xf32>
    %332 = math.tanh %326 : vector<4x256xf32>
    %333 = vector.extract_strided_slice %331 {offsets = [0, 0], sizes = [4, 64], strides = [1, 1]} : vector<4x256xf32> to vector<4x64xf32>
    %334 = vector.extract_strided_slice %331 {offsets = [0, 64], sizes = [4, 64], strides = [1, 1]} : vector<4x256xf32> to vector<4x64xf32>
    %335 = vector.extract_strided_slice %332 {offsets = [0, 128], sizes = [4, 64], strides = [1, 1]} : vector<4x256xf32> to vector<4x64xf32>
    %336 = vector.extract_strided_slice %331 {offsets = [0, 192], sizes = [4, 64], strides = [1, 1]} : vector<4x256xf32> to vector<4x64xf32>
    %337 = arith.mulf %334, %319 : vector<4x64xf32>
    %338 = arith.mulf %333, %335 : vector<4x64xf32>
    %339 = arith.addf %337, %338 : vector<4x64xf32>
    %340 = math.tanh %339 : vector<4x64xf32>
    %341 = arith.mulf %336, %340 : vector<4x64xf32>
    %342 = vector.extract_strided_slice %218 {offsets = [24, 0], sizes = [4, 256], strides = [1, 1]} : vector<32x256xf32> to vector<4x256xf32>
    %343 = vector.extract_strided_slice %218 {offsets = [4, 0], sizes = [4, 256], strides = [1, 1]} : vector<32x256xf32> to vector<4x256xf32>
    %344 = arith.select %18, %342, %343 : vector<4x256xi1>, vector<4x256xf32>
    %cst_52 = arith.constant dense<0.000000e+00> : vector<4x256xf32>
    %345 = tpu.matmul %341, %219, %cst_52 {dimension_numbers = #tpu.dot_dimension_numbers<[1], [0], [0], [1], [0, 0, 1, 1], [], []>} : vector<4x64xf32>, vector<64x256xf32>, vector<4x256xf32> -> vector<4x256xf32>
    %346 = arith.addf %344, %345 : vector<4x256xf32>
    %347 = arith.negf %346 : vector<4x256xf32>
    %348 = math.exp %347 : vector<4x256xf32>
    %cst_53 = arith.constant 1.000000e+00 : f32
    %349 = vector.broadcast %cst_53 : f32 to vector<4x256xf32>
    %350 = arith.addf %349, %348 : vector<4x256xf32>
    %351 = arith.divf %349, %350 : vector<4x256xf32>
    %352 = math.tanh %346 : vector<4x256xf32>
    %353 = vector.extract_strided_slice %351 {offsets = [0, 0], sizes = [4, 64], strides = [1, 1]} : vector<4x256xf32> to vector<4x64xf32>
    %354 = vector.extract_strided_slice %351 {offsets = [0, 64], sizes = [4, 64], strides = [1, 1]} : vector<4x256xf32> to vector<4x64xf32>
    %355 = vector.extract_strided_slice %352 {offsets = [0, 128], sizes = [4, 64], strides = [1, 1]} : vector<4x256xf32> to vector<4x64xf32>
    %356 = vector.extract_strided_slice %351 {offsets = [0, 192], sizes = [4, 64], strides = [1, 1]} : vector<4x256xf32> to vector<4x64xf32>
    %357 = arith.mulf %354, %339 : vector<4x64xf32>
    %358 = arith.mulf %353, %355 : vector<4x64xf32>
    %359 = arith.addf %357, %358 : vector<4x64xf32>
    %360 = math.tanh %359 : vector<4x64xf32>
    %361 = arith.mulf %356, %360 : vector<4x64xf32>
    %362 = vector.extract_strided_slice %218 {offsets = [28, 0], sizes = [4, 256], strides = [1, 1]} : vector<32x256xf32> to vector<4x256xf32>
    %363 = vector.extract_strided_slice %218 {offsets = [0, 0], sizes = [4, 256], strides = [1, 1]} : vector<32x256xf32> to vector<4x256xf32>
    %364 = arith.select %18, %362, %363 : vector<4x256xi1>, vector<4x256xf32>
    %cst_54 = arith.constant dense<0.000000e+00> : vector<4x256xf32>
    %365 = tpu.matmul %361, %219, %cst_54 {dimension_numbers = #tpu.dot_dimension_numbers<[1], [0], [0], [1], [0, 0, 1, 1], [], []>} : vector<4x64xf32>, vector<64x256xf32>, vector<4x256xf32> -> vector<4x256xf32>
    %366 = arith.addf %364, %365 : vector<4x256xf32>
    %367 = arith.negf %366 : vector<4x256xf32>
    %368 = math.exp %367 : vector<4x256xf32>
    %cst_55 = arith.constant 1.000000e+00 : f32
    %369 = vector.broadcast %cst_55 : f32 to vector<4x256xf32>
    %370 = arith.addf %369, %368 : vector<4x256xf32>
    %371 = arith.divf %369, %370 : vector<4x256xf32>
    %372 = math.tanh %366 : vector<4x256xf32>
    %373 = vector.extract_strided_slice %371 {offsets = [0, 0], sizes = [4, 64], strides = [1, 1]} : vector<4x256xf32> to vector<4x64xf32>
    %374 = vector.extract_strided_slice %371 {offsets = [0, 64], sizes = [4, 64], strides = [1, 1]} : vector<4x256xf32> to vector<4x64xf32>
    %375 = vector.extract_strided_slice %372 {offsets = [0, 128], sizes = [4, 64], strides = [1, 1]} : vector<4x256xf32> to vector<4x64xf32>
    %376 = vector.extract_strided_slice %371 {offsets = [0, 192], sizes = [4, 64], strides = [1, 1]} : vector<4x256xf32> to vector<4x64xf32>
    %377 = arith.mulf %374, %359 : vector<4x64xf32>
    %378 = arith.mulf %373, %375 : vector<4x64xf32>
    %379 = arith.addf %377, %378 : vector<4x64xf32>
    %380 = math.tanh %379 : vector<4x64xf32>
    %381 = arith.mulf %376, %380 : vector<4x64xf32>
    %382 = vector.extract_strided_slice %241 {offsets = [0, 0], sizes = [4, 32], strides = [1, 1]} : vector<4x64xf32> to vector<4x32xf32>
    %383 = vector.extract_strided_slice %261 {offsets = [0, 0], sizes = [4, 32], strides = [1, 1]} : vector<4x64xf32> to vector<4x32xf32>
    %384 = vector.extract_strided_slice %281 {offsets = [0, 0], sizes = [4, 32], strides = [1, 1]} : vector<4x64xf32> to vector<4x32xf32>
    %385 = vector.extract_strided_slice %301 {offsets = [0, 0], sizes = [4, 32], strides = [1, 1]} : vector<4x64xf32> to vector<4x32xf32>
    %386 = vector.extract_strided_slice %321 {offsets = [0, 0], sizes = [4, 32], strides = [1, 1]} : vector<4x64xf32> to vector<4x32xf32>
    %387 = vector.extract_strided_slice %341 {offsets = [0, 0], sizes = [4, 32], strides = [1, 1]} : vector<4x64xf32> to vector<4x32xf32>
    %388 = vector.extract_strided_slice %361 {offsets = [0, 0], sizes = [4, 32], strides = [1, 1]} : vector<4x64xf32> to vector<4x32xf32>
    %389 = vector.extract_strided_slice %381 {offsets = [0, 0], sizes = [4, 32], strides = [1, 1]} : vector<4x64xf32> to vector<4x32xf32>
    %390 = tpu.concatenate %382, %383, %384, %385, %386, %387, %388, %389 in 0 : vector<4x32xf32>, vector<4x32xf32>, vector<4x32xf32>, vector<4x32xf32>, vector<4x32xf32>, vector<4x32xf32>, vector<4x32xf32>, vector<4x32xf32> -> vector<32x32xf32>
    %391 = vector.extract_strided_slice %381 {offsets = [0, 32], sizes = [4, 32], strides = [1, 1]} : vector<4x64xf32> to vector<4x32xf32>
    %392 = vector.extract_strided_slice %361 {offsets = [0, 32], sizes = [4, 32], strides = [1, 1]} : vector<4x64xf32> to vector<4x32xf32>
    %393 = vector.extract_strided_slice %341 {offsets = [0, 32], sizes = [4, 32], strides = [1, 1]} : vector<4x64xf32> to vector<4x32xf32>
    %394 = vector.extract_strided_slice %321 {offsets = [0, 32], sizes = [4, 32], strides = [1, 1]} : vector<4x64xf32> to vector<4x32xf32>
    %395 = vector.extract_strided_slice %301 {offsets = [0, 32], sizes = [4, 32], strides = [1, 1]} : vector<4x64xf32> to vector<4x32xf32>
    %396 = vector.extract_strided_slice %281 {offsets = [0, 32], sizes = [4, 32], strides = [1, 1]} : vector<4x64xf32> to vector<4x32xf32>
    %397 = vector.extract_strided_slice %261 {offsets = [0, 32], sizes = [4, 32], strides = [1, 1]} : vector<4x64xf32> to vector<4x32xf32>
    %398 = vector.extract_strided_slice %241 {offsets = [0, 32], sizes = [4, 32], strides = [1, 1]} : vector<4x64xf32> to vector<4x32xf32>
    %399 = tpu.concatenate %391, %392, %393, %394, %395, %396, %397, %398 in 0 : vector<4x32xf32>, vector<4x32xf32>, vector<4x32xf32>, vector<4x32xf32>, vector<4x32xf32>, vector<4x32xf32>, vector<4x32xf32>, vector<4x32xf32> -> vector<32x32xf32>
    %400 = tpu.concatenate %390, %399 in 1 : vector<32x32xf32>, vector<32x32xf32> -> vector<32x64xf32>
    "tpu.trace_start"() <{level = 10 : i32, message = "td,sd->ts"}> : () -> ()
    %cst_56 = arith.constant dense<0.000000e+00> : vector<32x32xf32>
    %401 = tpu.matmul %400, %400, %cst_56 {dimension_numbers = #tpu.dot_dimension_numbers<[1], [1], [0], [0], [0, 0, 1, 0], [], []>} : vector<32x64xf32>, vector<32x64xf32>, vector<32x32xf32> -> vector<32x32xf32>
    "tpu.trace_stop"() : () -> ()
    %402 = tpu.iota {dimensions = array<i32: 0>} : vector<32x32xi32>
    %c4_i32 = arith.constant 4 : i32
    %c0_i32_57 = arith.constant 0 : i32
    %403 = arith.cmpi eq, %c4_i32, %c0_i32_57 : i32
    %c1_i32_58 = arith.constant 1 : i32
    %404 = arith.select %403, %c1_i32_58, %c4_i32 : i32
    %405 = vector.broadcast %404 : i32 to vector<32x32xi32>
    %406 = arith.remsi %402, %405 : vector<32x32xi32>
    %c0_i32_59 = arith.constant 0 : i32
    %407 = vector.broadcast %c0_i32_59 : i32 to vector<32x32xi32>
    %408 = arith.cmpi ne, %406, %407 : vector<32x32xi32>
    %c0_i32_60 = arith.constant 0 : i32
    %409 = vector.broadcast %c0_i32_60 : i32 to vector<32x32xi32>
    %410 = arith.cmpi slt, %406, %409 : vector<32x32xi32>
    %c0_i32_61 = arith.constant 0 : i32
    %411 = arith.cmpi slt, %404, %c0_i32_61 : i32
    %412 = vector.broadcast %411 : i1 to vector<32x32xi1>
    %413 = vector.broadcast %412 : vector<32x32xi1> to vector<32x32xi1>
    %414 = arith.xori %410, %413 : vector<32x32xi1>
    %415 = arith.andi %414, %408 : vector<32x32xi1>
    %416 = vector.broadcast %404 : i32 to vector<32x32xi32>
    %417 = arith.addi %406, %416 : vector<32x32xi32>
    %418 = arith.select %415, %417, %406 : vector<32x32xi1>, vector<32x32xi32>
    %419 = tpu.iota {dimensions = array<i32: 1>} : vector<32x32xi32>
    %c4_i32_62 = arith.constant 4 : i32
    %c0_i32_63 = arith.constant 0 : i32
    %420 = arith.cmpi eq, %c4_i32_62, %c0_i32_63 : i32
    %c1_i32_64 = arith.constant 1 : i32
    %421 = arith.select %420, %c1_i32_64, %c4_i32_62 : i32
    %422 = vector.broadcast %421 : i32 to vector<32x32xi32>
    %423 = arith.remsi %419, %422 : vector<32x32xi32>
    %c0_i32_65 = arith.constant 0 : i32
    %424 = vector.broadcast %c0_i32_65 : i32 to vector<32x32xi32>
    %425 = arith.cmpi ne, %423, %424 : vector<32x32xi32>
    %c0_i32_66 = arith.constant 0 : i32
    %426 = vector.broadcast %c0_i32_66 : i32 to vector<32x32xi32>
    %427 = arith.cmpi slt, %423, %426 : vector<32x32xi32>
    %c0_i32_67 = arith.constant 0 : i32
    %428 = arith.cmpi slt, %421, %c0_i32_67 : i32
    %429 = vector.broadcast %428 : i1 to vector<32x32xi1>
    %430 = vector.broadcast %429 : vector<32x32xi1> to vector<32x32xi1>
    %431 = arith.xori %427, %430 : vector<32x32xi1>
    %432 = arith.andi %431, %425 : vector<32x32xi1>
    %433 = vector.broadcast %421 : i32 to vector<32x32xi32>
    %434 = arith.addi %423, %433 : vector<32x32xi32>
    %435 = arith.select %432, %434, %423 : vector<32x32xi1>, vector<32x32xi32>
    %436 = arith.cmpi eq, %418, %435 : vector<32x32xi32>
    %cst_68 = arith.constant -1.000000e+30 : f32
    %437 = vector.broadcast %cst_68 : f32 to vector<32x32xf32>
    %438 = arith.select %436, %401, %437 : vector<32x32xi1>, vector<32x32xf32>
    %cst_69 = arith.constant dense<0xFF800000> : vector<32xf32>
    %439 = vector.multi_reduction <maximumf>, %438, %cst_69 [1] : vector<32x32xf32> to vector<32xf32>
    %440 = vector.shape_cast %439 : vector<32xf32> to vector<32x1xf32>
    %441 = vector.broadcast %440 : vector<32x1xf32> to vector<32x32xf32>
    %442 = arith.subf %438, %441 : vector<32x32xf32>
    %443 = math.exp %442 : vector<32x32xf32>
    %cst_70 = arith.constant dense<0.000000e+00> : vector<32xf32>
    %444 = vector.multi_reduction <add>, %443, %cst_70 [1] : vector<32x32xf32> to vector<32xf32>
    %445 = vector.shape_cast %444 : vector<32xf32> to vector<32x1xf32>
    %446 = vector.broadcast %445 : vector<32x1xf32> to vector<32x32xf32>
    %447 = arith.divf %443, %446 : vector<32x32xf32>
    %cst_71 = arith.constant dense<0.000000e+00> : vector<32x64xf32>
    %448 = tpu.matmul %447, %400, %cst_71 {dimension_numbers = #tpu.dot_dimension_numbers<[1], [0], [0], [1], [0, 0, 1, 1], [], []>} : vector<32x32xf32>, vector<32x64xf32>, vector<32x64xf32> -> vector<32x64xf32>
    %449 = vector.extract_strided_slice %448 {offsets = [0, 0], sizes = [4, 64], strides = [1, 1]} : vector<32x64xf32> to vector<4x64xf32>
    %450 = vector.extract_strided_slice %448 {offsets = [4, 0], sizes = [4, 64], strides = [1, 1]} : vector<32x64xf32> to vector<4x64xf32>
    %451 = vector.extract_strided_slice %448 {offsets = [8, 0], sizes = [4, 64], strides = [1, 1]} : vector<32x64xf32> to vector<4x64xf32>
    %452 = vector.extract_strided_slice %448 {offsets = [12, 0], sizes = [4, 64], strides = [1, 1]} : vector<32x64xf32> to vector<4x64xf32>
    %453 = vector.extract_strided_slice %448 {offsets = [16, 0], sizes = [4, 64], strides = [1, 1]} : vector<32x64xf32> to vector<4x64xf32>
    %454 = vector.extract_strided_slice %448 {offsets = [20, 0], sizes = [4, 64], strides = [1, 1]} : vector<32x64xf32> to vector<4x64xf32>
    %455 = vector.extract_strided_slice %448 {offsets = [24, 0], sizes = [4, 64], strides = [1, 1]} : vector<32x64xf32> to vector<4x64xf32>
    %456 = vector.extract_strided_slice %448 {offsets = [28, 0], sizes = [4, 64], strides = [1, 1]} : vector<32x64xf32> to vector<4x64xf32>
    %457 = arith.maximumf %449, %450 : vector<4x64xf32>
    %458 = arith.maximumf %457, %451 : vector<4x64xf32>
    %459 = arith.maximumf %458, %452 : vector<4x64xf32>
    %460 = arith.maximumf %459, %453 : vector<4x64xf32>
    %461 = arith.maximumf %460, %454 : vector<4x64xf32>
    %462 = arith.maximumf %461, %455 : vector<4x64xf32>
    %463 = arith.maximumf %462, %456 : vector<4x64xf32>
    %464 = vector.extract_strided_slice %463 {offsets = [0, 0], sizes = [2, 64], strides = [1, 1]} : vector<4x64xf32> to vector<2x64xf32>
    %465 = vector.extract_strided_slice %463 {offsets = [2, 0], sizes = [2, 64], strides = [1, 1]} : vector<4x64xf32> to vector<2x64xf32>
    %466 = tpu.concatenate %464, %465 in 1 : vector<2x64xf32>, vector<2x64xf32> -> vector<2x128xf32>
    %c0_72 = arith.constant 0 : index
    %c0_73 = arith.constant 0 : index
    %467 = vector.load %arg8[%c0_72, %c0_73] : memref<128x3xf32, #tpu.memory_space<vmem>>, vector<128x3xf32>
    %cst_74 = arith.constant dense<0.000000e+00> : vector<2x3xf32>
    %468 = tpu.matmul %466, %467, %cst_74 {dimension_numbers = #tpu.dot_dimension_numbers<[1], [0], [0], [1], [0, 0, 1, 1], [], []>} : vector<2x128xf32>, vector<128x3xf32>, vector<2x3xf32> -> vector<2x3xf32>
    %c0_75 = arith.constant 0 : index
    %c0_76 = arith.constant 0 : index
    %469 = vector.load %arg9[%c0_75, %c0_76] : memref<1x3xf32, #tpu.memory_space<vmem>>, vector<1x3xf32>
    %470 = vector.broadcast %469 : vector<1x3xf32> to vector<2x3xf32>
    %471 = arith.addf %468, %470 : vector<2x3xf32>
    %c0_77 = arith.constant 0 : index
    %c0_78 = arith.constant 0 : index
    %472 = vector.load %arg10[%c0_77, %c0_78] : memref<2x3xf32, #tpu.memory_space<vmem>>, vector<2x3xf32>
    tpu.vector_store %arg10[%c0_77, %c0_78], %471 {strides = array<i32>} : memref<2x3xf32, #tpu.memory_space<vmem>>, vector<2x3xf32>,
    return
  }
}

</mosaic_0001>

<bundles_post_ra>
// kernel: bilstm_model_forward.1
= control target key start
LH: loop header
LB: loop body
LE: loop exit
PB: predicated region body
PF: predicated region fallthrough
CT: control target
= control target key end

     0   :  { %15 = vsyncpa [#allocation3], 0  ;;  %s4528_s0 = inlined_call_operand.vmem [shape: s32[32,1], index: 0, kind: input, shape index: {}]   ;;  %s4529_s1 = inlined_call_operand.vmem [shape: f32[128,32], index: 1, kind: input, shape index: {}]   ;;  %s4530_s2 = inlined_call_operand.vmem [shape: f32[32,256], index: 2, kind: input, shape index: {}]   ;;  %s4531_s3 = inlined_call_operand.vmem [shape: f32[64,256], index: 3, kind: input, shape index: {}]   ;;  %s4532_s4 = inlined_call_operand.vmem [shape: f32[1,256], index: 4, kind: input, shape index: {}]   ;;  %s4533_s5 = inlined_call_operand.vmem [shape: f32[64,256], index: 5, kind: input, shape index: {}]   ;;  %s4534_s6 = inlined_call_operand.hbm [shape: f32[64,256], index: 6, kind: input, shape index: {}]   ;;  %s4535_s7 = inlined_call_operand.hbm [shape: f32[1,256], index: 7, kind: input, shape index: {}]   ;;  %s4536_s8 = inlined_call_operand.vmem [shape: f32[128,3], index: 8, kind: input, shape index: {}]   ;;  %s4537_s9 = inlined_call_operand.vmem [shape: f32[1,3], index: 9, kind: input, shape index: {}]   ;;  %s4538_s10 = inlined_call_operand.hbm [shape: f32[2,3], index: 10, kind: output, shape index: {}]  }
   0x1   :  { %16 = vsyncpa [#allocation6], 0 }
   0x2   :  { %17 = vsyncpa [#allocation4], 0  ;;  %s3699_s13 = smov [#allocation2]   ;;  %s3627_s17 = scalar_lea.hbm %s4534_s6, 2048 }
   0x3   :  { %s35_s14 = sshll.u32 %s3699_s13, 4  ;;  %p3628_p0 = scmp.ne.s32.totalorder %s4534_s6, %s3627_s17  ;;  %s36_s14 = int_to_ptr.vmem [resolvable:$true] %s35_s14 }
   0x4   :  { %p3631_p1 = scmp.lt.u32.totalorder %s3627_s17, %s4534_s6 }
   0x6   :  { %p3633_p2 = pnand %p3631_p1, %p3628_p0 }
   0x8   :  { %3636 = shalt.err (!%p3633_p2)
}
   0x9   :  { %s3637_s22 = scalar_lea.vmem %s36_s14, 2048  ;;  %p3642_p4 = scmp.lt.s32.totalorder %s36_s14, %s36_s14 }
   0xa   :  { %p3638_p3 = scmp.ne.s32.totalorder %s36_s14, %s3637_s22  ;;  %p3643_p5 = scmp.lt.s32.totalorder %s3637_s22, %s3637_s22 }
   0xc   :  { %p3644_p6 = por %p3643_p5, %p3642_p4 }
   0xe   :  { %p3645_p7 = pnand %p3644_p6, %p3638_p3 }
  0x10   :  { %3648 = shalt.err (!%p3645_p7)
}
  0x11   :  { %s3700_s23 = smov 256   ;;  %s3701_s24 = smov 16  }
  0x12   :  { %41 = dma.hbm_to_vmem [thread:$0]  %s4534_s6, 2048, %s36_s14, [#allocation3], %s3700_s23, %s3700_s23, %s3701_s24  }
  0x13   :  { %s3702_s27 = smov [#allocation5]   ;;  %s3649_s11 = scalar_lea.hbm %s4535_s7, 32 }
  0x14   :  { %s48_s28 = sshll.u32 %s3702_s27, 4  ;;  %p3650_p8 = scmp.ne.s32.totalorder %s4535_s7, %s3649_s11  ;;  %s49_s28 = int_to_ptr.vmem [resolvable:$true] %s48_s28 }
  0x15   :  { %p3653_p9 = scmp.lt.u32.totalorder %s3649_s11, %s4535_s7 }
  0x17   :  { %p3655_p10 = pnand %p3653_p9, %p3650_p8 }
  0x19   :  { %3658 = shalt.err (!%p3655_p10)
}
  0x1a   :  { %s3659_s17 = scalar_lea.vmem %s49_s28, 32  ;;  %p3664_p12 = scmp.lt.s32.totalorder %s49_s28, %s49_s28 }
  0x1b   :  { %p3660_p11 = scmp.ne.s32.totalorder %s49_s28, %s3659_s17  ;;  %p3665_p13 = scmp.lt.s32.totalorder %s3659_s17, %s3659_s17 }
  0x1d   :  { %p3666_p0 = por %p3665_p13, %p3664_p12 }
  0x1f   :  { %p3667_p1 = pnand %p3666_p0, %p3660_p11 }
  0x21   :  { %3670 = shalt.err (!%p3667_p1)
}
  0x22   :  { %51 = dma.hbm_to_vmem [thread:$0]  %s4535_s7, 32, %s49_s28, [#allocation6]  }
  0x23   :  { %3693 = dma.done.wait [#allocation3], 2048  }
  0x24   :  { %3694 = vsyncadd [#allocation3], 4294965248 }
  0x25   :  { %3695 = dma.done.wait [#allocation6], 32  }
  0x26   :  { %3696 = vsyncadd [#allocation6], 4294967264  ;;  %v3703_v0 = vmov 0   ;;  %v91_v1 = vld [vmem:[%s4528_s0] sm:$0xff]  ;;  %v93_v2 = vld [vmem:[%s4528_s0 + $0x10] sm:$0xff]  ;;  %v62_v41 = vlaneseq  ;;  %v3704_v45 = vmov 1.0  }
  0x27   :  { %3417 = vset.pattern.permute.xlu0 %v3703_v0  ;;  %3418 = vset.pattern.permute.xlu1 %v3703_v0  ;;  %v92_v3 = vld [vmem:[%s4528_s0 + $0x8] sm:$0xff]  ;;  %v119_v4 = vld [vmem:[%s4529_s1] sm:$0xff]  ;;  %v94_v6 = vld [vmem:[%s4528_s0 + $0x18] sm:$0xff]  ;;  %v3705_v53 = vmov 0.0   ;;  %vm240_vm4 = vcmask 261120   ;;  %vm366_vm7 = vcmask 523264  }
  0x28   :  { %96 = vperm.xlu0 %3417, %v91_v1   ;;  %102 = vperm.xlu1 %3418, %v93_v2   ;;  %v120_v5 = vld [vmem:[%s4529_s1 + $0x8] sm:$0xff]  ;;  %v121_v8 = vld [vmem:[%s4529_s1 + $0x10] sm:$0xff]  ;;  %v122_v9 = vld [vmem:[%s4529_s1 + $0x18] sm:$0xff]  ;;  %v3874_v42 = vand.u32 127, %v62_v41  ;;  %vm1237_vm8 = vcmask 1043456   ;;  %vm3708_vm14 = vmmov 0  }
  0x29   :  { %v3050_v7 = vpack.c.bf16 %v120_v5, %v119_v4  ;;  %v3054_v10 = vpack.c.bf16 %v122_v9, %v121_v8  ;;  %v123_v11 = vld [vmem:[%s4529_s1 + $0x20] sm:$0xff]  ;;  %v124_v12 = vld [vmem:[%s4529_s1 + $0x28] sm:$0xff]  ;;  %v125_v14 = vld [vmem:[%s4529_s1 + $0x30] sm:$0xff]  ;;  %317 = vmatprep.mubr.f32.mxu1 %v3705_v53  ;;  %s3709_s21 = smov [#allocation7]   ;;  %vm2803_vm15 = vcmask 17408  }
  0x2a   :  { %v3058_v13 = vpack.c.bf16 %v124_v12, %v123_v11  ;;  %v126_v15 = vld [vmem:[%s4529_s1 + $0x38] sm:$0xff]  ;;  %v127_v16 = vld [vmem:[%s4529_s1 + $0x40] sm:$0xff]  ;;  %v221_v17 = vld [vmem:[%s4530_s2 + $0x8] sm:$0xff]  ;;  %s2811_s22 = sshll.u32 %s3709_s21, 4  ;;  %s2812_s22 = int_to_ptr.vmem [resolvable:$true] %s2811_s22 }
  0x2b   :  { %3051 = vmatprep.subr.bf16.mxu0 %v3050_v7  ;;  %v223_v18 = vld [vmem:[%s4530_s2 + $0x18] sm:$0xff]  ;;  %v220_v19 = vld [vmem:[%s4530_s2] sm:$0xff]  ;;  %v3062_v20 = vpack.c.bf16 %v126_v15, %v125_v14  ;;  %v222_v22 = vld [vmem:[%s4530_s2 + $0x10] sm:$0xff]  ;;  %s3671_s23 = scalar_lea.vmem %s2812_s22, 32  ;;  %p3676_p3 = scmp.lt.s32.totalorder %s2812_s22, %s2812_s22 }
  0x2c   :  { %99 = vperm.xlu0 %3417, %v92_v3   ;;  %105 = vperm.xlu1 %3418, %v94_v6   ;;  %v3082_v21 = vpack.c.bf16 %v223_v18, %v221_v17  ;;  %v225_v23 = vld [vmem:[%s4530_s2 + $0x28] sm:$0xff]  ;;  %v227_v24 = vld [vmem:[%s4530_s2 + $0x38] sm:$0xff]  ;;  %v3084_v26 = vpack.c.bf16 %v222_v22, %v220_v19  ;;  %v224_v28 = vld [vmem:[%s4530_s2 + $0x20] sm:$0xff]  ;;  %v64_v19 = vadd.s32 128, %v3874_v42  ;;  %p3672_p2 = scmp.ne.s32.totalorder %s2812_s22, %s3671_s23  ;;  %p3677_p4 = scmp.lt.s32.totalorder %s3671_s23, %s3671_s23 }
  0x2d   :  { %3053 = vmatpush3.bf16.msra.mxu0 %v3050_v7  ;;  %v128_v25 = vld [vmem:[%s4529_s1 + $0x48] sm:$0xff]  ;;  %v3086_v27 = vpack.c.bf16 %v227_v24, %v225_v23  ;;  %v226_v29 = vld [vmem:[%s4530_s2 + $0x30] sm:$0xff]  ;;  %v130_v33 = vld [vmem:[%s4529_s1 + $0x58] sm:$0xff]  ;;  %v69_v23 = vand.u32 63, %v3874_v42 }
  0x2e   :  { %3055 = vmatprep.subr.bf16.mxu0 %v3054_v10  ;;  %3083 = vmatprep.subr.bf16.mxu1 %v3082_v21  ;;  %v3088_v30 = vpack.c.bf16 %v226_v29, %v224_v28  ;;  %v3066_v31 = vpack.c.bf16 %v128_v25, %v127_v16  ;;  %v129_v32 = vld [vmem:[%s4529_s1 + $0x50] sm:$0xff]  ;;  %v131_v35 = vld [vmem:[%s4529_s1 + $0x60] sm:$0xff]  ;;  %v132_v36 = vld [vmem:[%s4529_s1 + $0x68] sm:$0xff]  ;;  %p3678_p5 = por %p3677_p4, %p3676_p3 }
  0x2f   :  { %3085 = vmatpush1.bf16.msra.mxu1 %v3084_v26  ;;  %v3070_v34 = vpack.c.bf16 %v130_v33, %v129_v32  ;;  %v3074_v37 = vpack.c.bf16 %v132_v36, %v131_v35  ;;  %v133_v38 = vld [vmem:[%s4529_s1 + $0x70] sm:$0xff]  ;;  %v134_v39 = vld [vmem:[%s4529_s1 + $0x78] sm:$0xff]  ;;  %v343_v48 = vld [vmem:[%s4531_s3 + $0x8] sm:$0xff]  ;;  %v76_v26 = vand.u32 63, %v64_v19  ;;  %vm3996_vm5 = vcmp.lt.s32.totalorder %v69_v23, 32 }
  0x30   :  { %3087 = vmatprep.subr.bf16.mxu1 %v3086_v27  ;;  %v3078_v40 = vpack.c.bf16 %v134_v39, %v133_v38  ;;  %v345_v49 = vld [vmem:[%s4531_s3 + $0x18] sm:$0xff]  ;;  %v342_v51 = vld [vmem:[%s4531_s3] sm:$0xff]  ;;  %v344_v52 = vld [vmem:[%s4531_s3 + $0x10] sm:$0xff]  ;;  %p3679_p6 = pnand %p3678_p5, %p3672_p2 }
  0x31   :  { %3057 = vmatpush3.bf16.msra.mxu0 %v3054_v10  ;;  %v3886_v50 = vpack.c.bf16 %v345_v49, %v343_v48  ;;  %v3895_v54 = vpack.c.bf16 %v344_v52, %v342_v51  ;;  %v347_v55 = vld [vmem:[%s4531_s3 + $0x28] sm:$0xff]  ;;  %v349_v56 = vld [vmem:[%s4531_s3 + $0x38] sm:$0xff]  ;;  %v346_v58 = vld [vmem:[%s4531_s3 + $0x20] sm:$0xff]  ;;  %vm4000_vm6 = vcmp.lt.s32.totalorder %v76_v26, 32 }
  0x32   :  { %3059 = vmatprep.subr.bf16.mxu0 %v3058_v13  ;;  %v3907_v57 = vpack.c.bf16 %v349_v56, %v347_v55  ;;  %v348_v59 = vld [vmem:[%s4531_s3 + $0x30] sm:$0xff]  ;;  %v351_v61 = vld [vmem:[%s4531_s3 + $0x48] sm:$0xff]  ;;  %v353_v62 = vld [vmem:[%s4531_s3 + $0x58] sm:$0xff] }
  0x33   :  { %3089 = vmatpush1.bf16.msra.mxu1 %v3088_v30  ;;  %v3915_v60 = vpack.c.bf16 %v348_v59, %v346_v58  ;;  %v3925_v63 = vpack.c.bf16 %v353_v62, %v351_v61  ;;  %v350_v0 = vld [vmem:[%s4531_s3 + $0x40] sm:$0xff]  ;;  %v352_v1 = vld [vmem:[%s4531_s3 + $0x50] sm:$0xff]  ;;  %v355_v3 = vld [vmem:[%s4531_s3 + $0x68] sm:$0xff] }
  0x34   :  { %3091 = vmatprep.subr.bf16.mxu1 %v3886_v50  ;;  %v3933_v2 = vpack.c.bf16 %v352_v1, %v350_v0  ;;  %v357_v4 = vld [vmem:[%s4531_s3 + $0x78] sm:$0xff]  ;;  %v354_v6 = vld [vmem:[%s4531_s3 + $0x60] sm:$0xff]  ;;  %v356_v7 = vld [vmem:[%s4531_s3 + $0x70] sm:$0xff] }
  0x35   :  { %3061 = vmatpush3.bf16.msra.mxu0 %v3058_v13  ;;  %v3943_v5 = vpack.c.bf16 %v357_v4, %v355_v3  ;;  %v3951_v8 = vpack.c.bf16 %v356_v7, %v354_v6  ;;  %v3983_v13 = vshrl.u32 %v62_v41, 7  ;;  %v228_v15 = vld [vmem:[%s4532_s4] sm:$0x3]  ;;  %s3706_s4 = smov 64   ;;  %vm3363_vm9 = vmpackc.low %vm366_vm7, %vm366_vm7 }
  0x36   :  { %3063 = vmatprep.subr.bf16.mxu0 %v3062_v20 }
  0x37   :  { %v232_v14 = vsub.s32 0, %v3983_v13  ;;  %v236_v17 = vsub.s32 1, %v3983_v13 }
  0x39   :  { %3065 = vmatpush3.bf16.msra.mxu0 %v3062_v20  ;;  %v233_v20 = vrot.slane %v228_v15, %v232_v14  ;;  %v237_v21 = vrot.slane %v228_v15, %v236_v17 }
  0x3a   :  { %3067 = vmatprep.subr.bf16.mxu0 %v3066_v31 }
  0x3d   :  { %3069 = vmatpush3.bf16.msra.mxu0 %v3066_v31 }
  0x3e   :  { %3071 = vmatprep.subr.bf16.mxu0 %v3070_v34 }
  0x41   :  { %3073 = vmatpush3.bf16.msra.mxu0 %v3070_v34 }
  0x42   :  { %3075 = vmatprep.subr.bf16.mxu0 %v3074_v37 }
  0x45   :  { %3077 = vmatpush3.bf16.msra.mxu0 %v3074_v37 }
  0x46   :  { %3079 = vmatprep.subr.bf16.mxu0 %v3078_v40 }
  0x49   :  { %3081 = vmatpush3.bf16.msra.mxu0 %v3078_v40 }
  0x4a   :  { %3155 = vmatprep.subr.bf16.mxu0 %v3886_v50 }
  0xa7   :  { %v97_v43 = vpop.permute.xlu0 %96  ;;  %v103_v44 = vpop.permute.xlu1 %102 }
  0xa8   :  { %vm107_vm0 = vcmp.eq.s32.totalorder %v3874_v42, %v97_v43  ;;  %vm109_vm1 = vcmp.eq.s32.totalorder %v3874_v42, %v103_v44 }
  0xa9   :  { %2981 = vmatprep.mubr.msk.f32.mxu0 %vm107_vm0, %v3704_v45 }
  0xab   :  { %v100_v46 = vpop.permute.xlu0 %99  ;;  %v106_v47 = vpop.permute.xlu1 %105 }
  0xac   :  { %vm108_vm2 = vcmp.eq.s32.totalorder %v3874_v42, %v100_v46  ;;  %vm110_vm3 = vcmp.eq.s32.totalorder %v3874_v42, %v106_v47 }
  0xad   :  { %2982 = vmatmul.mubr.msk.f32.vlgmr.msra.gmra.mrb[0].mxu0 %vm108_vm2, %v3704_v45 }
  0xae   :  { %2984 = vmatprep.mubr.msk.f32.mxu0 %vm109_vm1, %v3704_v45  ;;  %3157 = vmatpush1.bf16.msra.mxu0 %v3895_v54 }
  0xaf   :  { %3159 = vmatprep.subr.bf16.mxu0 %v3907_v57 }
  0xb1   :  { %2985 = vmatmul.mubr.msk.f32.gmra.mrb[2].mxu0 %vm110_vm3, %v3704_v45 }
  0xb2   :  { %873 = vmatprep.mubr.f32.mxu0 %v3705_v53  ;;  %3161 = vmatpush1.bf16.msra.mxu0 %v3915_v60 }
  0xb3   :  { %3163 = vmatprep.subr.bf16.mxu0 %v3925_v63 }
  0xb6   :  { %3165 = vmatpush1.bf16.msra.mxu0 %v3933_v2 }
  0xb7   :  { %3167 = vmatprep.subr.bf16.mxu0 %v3943_v5 }
  0xba   :  { %3169 = vmatpush1.bf16.msra.mxu0 %v3951_v8 }
  0xbb   :  { %3187 = vmatprep.subr.bf16.mxu0 %v3886_v50 }
 0x180   :  { %v2983_v9 = vpop.f32.mrb[0].mxu0 }
 0x181   :  { %v201_v10 = vpop.f32.mrb[1].mxu0 }
 0x182   :  { %2829 = vmatmul.mubr.msk.f32.vlgmr.msra.gmra.mrb[0].mxu1 %vm240_vm4, %v201_v10 }
 0x183   :  { %3093 = vmatpush1.bf16.msra.mxu1 %v3895_v54  ;;  %323 = vmatprep.mubr.f32.mxu1 %v3705_v53 }
 0x184   :  { %v2986_v11 = vpop.f32.mrb[2].mxu0  ;;  %3095 = vmatprep.subr.bf16.mxu1 %v3907_v57 }
 0x185   :  { %v211_v12 = vpop.f32.mrb[3].mxu0 }
 0x186   :  { %2830 = vmatmul.mubr.msk.f32.gmra.mrb[2].mxu1 %vm240_vm4, %v2983_v9 }
 0x187   :  { %3097 = vmatpush1.bf16.msra.mxu1 %v3915_v60  ;;  %329 = vmatprep.mubr.f32.mxu1 %v3705_v53 }
 0x188   :  { %3099 = vmatprep.subr.bf16.mxu1 %v3925_v63 }
 0x18a   :  { %2831 = vmatmul.mubr.msk.f32.gmra.mrb[4].mxu1 %vm240_vm4, %v211_v12 }
 0x18b   :  { %3101 = vmatpush1.bf16.msra.mxu1 %v3933_v2  ;;  %335 = vmatprep.mubr.f32.mxu1 %v3705_v53 }
 0x18c   :  { %3103 = vmatprep.subr.bf16.mxu1 %v3943_v5 }
 0x18e   :  { %2832 = vmatmul.mubr.msk.f32.gmra.mrb[6].mxu1 %vm240_vm4, %v2986_v11 }
 0x18f   :  { %3105 = vmatpush1.bf16.msra.mxu1 %v3951_v8  ;;  %434 = vmatprep.mubr.f32.mxu1 %v3705_v53 }
 0x190   :  { %3107 = vmatprep.subr.bf16.mxu1 %v3886_v50 }
 0x192   :  { %435 = vmatmul.mubr.f32.vlgmr.msra.gmra.mrb[8].mxu1 %v3705_v53 }
 0x193   :  { %3109 = vmatpush1.bf16.msra.mxu1 %v3895_v54  ;;  %534 = vmatprep.mubr.f32.mxu1 %v3705_v53 }
 0x194   :  { %3111 = vmatprep.subr.bf16.mxu1 %v3907_v57 }
 0x197   :  { %3113 = vmatpush1.bf16.msra.mxu1 %v3915_v60 }
 0x198   :  { %3115 = vmatprep.subr.bf16.mxu1 %v3925_v63 }
 0x19b   :  { %3117 = vmatpush1.bf16.msra.mxu1 %v3933_v2 }
 0x19c   :  { %3119 = vmatprep.subr.bf16.mxu1 %v3943_v5 }
 0x19f   :  { %3121 = vmatpush1.bf16.msra.mxu1 %v3951_v8 }
 0x1a0   :  { %3123 = vmatprep.subr.bf16.mxu1 %v3886_v50 }
 0x255   :  { %v319_v16 = vpop.f32.mrb[0].mxu1 }
 0x256   :  { %v321_v18 = vpop.f32.mrb[1].mxu1  ;;  %v320_v30 = vadd.f32 %v319_v16, %v233_v20 }
 0x257   :  { %v322_v35 = vadd.f32 %v321_v18, %v237_v21 }
 0x258   :  { %v1018_v44 = vrot.slane %v320_v30, 4 }
 0x259   :  { %v325_v22 = vpop.f32.mrb[2].mxu1  ;;  %v1019_v48 = vrot.slane %v322_v35, 4 }
 0x25a   :  { %v326_v24 = vadd.f32 %v325_v22, %v233_v20  ;;  %v327_v25 = vpop.f32.mrb[3].mxu1 }
 0x25b   :  { %v328_v27 = vadd.f32 %v327_v25, %v237_v21 }
 0x25c   :  { %v797_v31 = vrot.slane %v326_v24, 4 }
 0x25d   :  { %v331_v28 = vpop.f32.mrb[4].mxu1  ;;  %v798_v36 = vrot.slane %v328_v27, 4 }
 0x25e   :  { %v332_v32 = vadd.f32 %v331_v28, %v233_v20  ;;  %v333_v33 = vpop.f32.mrb[5].mxu1 }
 0x25f   :  { %v334_v37 = vadd.f32 %v333_v33, %v237_v21 }
 0x260   :  { %v576_v38 = vrot.slane %v332_v32, 4  ;;  %v4006_v39 = vsel %vm3996_vm5, %v332_v32, %v797_v31 }
 0x261   :  { %v577_v40 = vrot.slane %v334_v37, 4  ;;  %v337_v41 = vpop.f32.mrb[6].mxu1  ;;  %v4010_v43 = vsel %vm4000_vm6, %v334_v37, %v798_v36 }
 0x262   :  { %v338_v45 = vadd.f32 %v337_v41, %v233_v20  ;;  %v339_v46 = vpop.f32.mrb[7].mxu1  ;;  %v4014_v47 = vsel %vm3996_vm5, %v326_v24, %v576_v38 }
 0x263   :  { %v340_v49 = vadd.f32 %v339_v46, %v237_v21  ;;  %v4018_v51 = vsel %vm4000_vm6, %v328_v27, %v577_v40 }
 0x264   :  { %v360_v52 = vrot.slane %v338_v45, 4  ;;  %v4022_v55 = vsel %vm3996_vm5, %v338_v45, %v1018_v44 }
 0x265   :  { %v361_v56 = vrot.slane %v340_v49, 4  ;;  %v436_v58 = vpop.f32.mrb[8].mxu1  ;;  %v4026_v59 = vsel %vm4000_vm6, %v340_v49, %v1019_v48 }
 0x266   :  { %v364_v61 = vsel %vm3996_vm5, %v320_v30, %v360_v52  ;;  %v438_v62 = vpop.f32.mrb[9].mxu1 }
 0x267   :  { %v441_v0 = vadd.f32 %v436_v58, %v364_v61  ;;  %v365_v1 = vsel %vm4000_vm6, %v322_v35, %v361_v56 }
 0x268   :  { %v442_v4 = vadd.f32 %v438_v62, %v365_v1 }
 0x269   :  { %v2833_v3 = vmul.f32 -1.442695, %v441_v0 }
 0x26a   :  { %v2834_v12 = vmul.f32 -1.442695, %v442_v4 }
 0x26b   :  { %3419 = vpow2.f32 %v2833_v3 }
 0x26c   :  { %3421 = vtanh.f32 %v442_v4 }
 0x275   :  { %v3420_v6 = vpop.eup %3419 }
 0x276   :  { %v449_v7 = vadd.f32 1.0, %v3420_v6  ;;  %v3422_v9 = vpop.eup %3421 }
 0x278   :  { %3423 = vrcp.f32 %v449_v7 }
 0x279   :  { %3425 = vpow2.f32 %v2834_v12 }
 0x282   :  { %v3424_v10 = vpop.eup %3423 }
 0x283   :  { %v457_v11 = vmul.f32 %v3424_v10, %v3422_v9  ;;  %v3426_v15 = vpop.eup %3425  ;;  %v456_v18 = vmul.f32 0.0, %v3424_v10 }
 0x284   :  { %v450_v16 = vadd.f32 1.0, %v3426_v15 }
 0x285   :  { %459 = vrot.lane.b32.xlu0 %v457_v11, %s3706_s4 }
 0x286   :  { %3427 = vrcp.f32 %v450_v16 }
 0x290   :  { %v3428_v21 = vpop.eup %3427 }
 0x2f7   :  { %v460_v19 = vpop.permute.xlu0 %459 }
 0x2f8   :  { %v462_v20 = vadd.f32 %v460_v19, %v456_v18 }
 0x2fa   :  { %3429 = vtanh.f32 %v462_v20  ;;  %v563_v37 = vrot.slane %v462_v20, 4 }
 0x304   :  { %v3430_v22 = vpop.eup %3429 }
 0x305   :  { %v4033_v23 = vmul.f32 %v3430_v22, %v3428_v21 }
 0x307   :  { %466 = vrot.lane.b32.xlu1 %v4033_v23, %s3706_s4 }
 0x379   :  { %v467_v24 = vpop.permute.xlu1 %466 }
 0x37a   :  { %2835 = vmatmul.mubr.msk.f32.vlgmr.msra.gmra.mrb[10].mxu1 %vm366_vm7, %v467_v24 }
 0x37b   :  { %3125 = vmatpush1.bf16.msra.mxu1 %v3895_v54  ;;  %652 = vmatprep.mubr.f32.mxu1 %v3705_v53 }
 0x37c   :  { %3127 = vmatprep.subr.bf16.mxu1 %v3907_v57 }
 0x37f   :  { %3129 = vmatpush1.bf16.msra.mxu1 %v3915_v60 }
 0x380   :  { %3131 = vmatprep.subr.bf16.mxu1 %v3925_v63 }
 0x383   :  { %3133 = vmatpush1.bf16.msra.mxu1 %v3933_v2 }
 0x384   :  { %3135 = vmatprep.subr.bf16.mxu1 %v3943_v5 }
 0x387   :  { %3137 = vmatpush1.bf16.msra.mxu1 %v3951_v8 }
 0x388   :  { %3139 = vmatprep.subr.bf16.mxu1 %v3886_v50 }
 0x44d   :  { %v536_v25 = vpop.f32.mrb[10].mxu1 }
 0x44e   :  { %v543_v26 = vrot.slane %v536_v25, 4  ;;  %v538_v27 = vpop.f32.mrb[11].mxu1 }
 0x44f   :  { %v544_v31 = vrot.slane %v538_v27, 4 }
 0x450   :  { %v547_v28 = vadd.f32 %v543_v26, %v364_v61 }
 0x451   :  { %v548_v32 = vadd.f32 %v544_v31, %v365_v1 }
 0x452   :  { %v2836_v30 = vmul.f32 -1.442695, %v547_v28 }
 0x453   :  { %v2837_v44 = vmul.f32 -1.442695, %v548_v32 }
 0x454   :  { %3431 = vpow2.f32 %v2836_v30 }
 0x455   :  { %3433 = vtanh.f32 %v548_v32 }
 0x45e   :  { %v3432_v33 = vpop.eup %3431 }
 0x45f   :  { %v555_v35 = vadd.f32 1.0, %v3432_v33  ;;  %v3434_v36 = vpop.eup %3433 }
 0x461   :  { %3435 = vrcp.f32 %v555_v35 }
 0x462   :  { %3437 = vpow2.f32 %v2837_v44 }
 0x46b   :  { %v3436_v38 = vpop.eup %3435 }
 0x46c   :  { %v566_v40 = vmul.f32 %v3436_v38, %v3434_v36  ;;  %v565_v41 = vmul.f32 %v3436_v38, %v563_v37  ;;  %v3438_v45 = vpop.eup %3437 }
 0x46d   :  { %v556_v46 = vadd.f32 1.0, %v3438_v45 }
 0x46e   :  { %568 = vrot.lane.b32.xlu0 %v566_v40, %s3706_s4 }
 0x46f   :  { %3439 = vrcp.f32 %v556_v46 }
 0x479   :  { %v3440_v52 = vpop.eup %3439 }
 0x4e0   :  { %v569_v48 = vpop.permute.xlu0 %568 }
 0x4e1   :  { %v571_v49 = vadd.f32 %v569_v48, %v565_v41 }
 0x4e3   :  { %3441 = vtanh.f32 %v571_v49  ;;  %v675_v11 = vrot.slane %v571_v49, 4 }
 0x4ed   :  { %v3442_v56 = vpop.eup %3441 }
 0x4ee   :  { %v4048_v58 = vmul.f32 %v3442_v56, %v3440_v52 }
 0x4f0   :  { %v583_v61 = vrot.slane %v4048_v58, 4 }
 0x4f2   :  { %584 = vrot.lane.b32.xlu1 %v583_v61, %s3706_s4 }
 0x564   :  { %v585_v62 = vpop.permute.xlu1 %584 }
 0x565   :  { %2838 = vmatmul.mubr.msk.f32.vlgmr.msra.gmra.mrb[12].mxu1 %vm366_vm7, %v585_v62 }
 0x566   :  { %3141 = vmatpush1.bf16.msra.mxu1 %v3895_v54  ;;  %755 = vmatprep.mubr.f32.mxu1 %v3705_v53 }
 0x567   :  { %3143 = vmatprep.subr.bf16.mxu1 %v3907_v57 }
 0x56a   :  { %3145 = vmatpush1.bf16.msra.mxu1 %v3915_v60 }
 0x56b   :  { %3147 = vmatprep.subr.bf16.mxu1 %v3925_v63 }
 0x56e   :  { %3149 = vmatpush1.bf16.msra.mxu1 %v3933_v2 }
 0x56f   :  { %3151 = vmatprep.subr.bf16.mxu1 %v3943_v5 }
 0x572   :  { %3153 = vmatpush1.bf16.msra.mxu1 %v3951_v8 }
 0x573   :  { %3171 = vmatprep.subr.bf16.mxu1 %v3886_v50 }
 0x638   :  { %v654_v0 = vpop.f32.mrb[12].mxu1 }
 0x639   :  { %v659_v1 = vadd.f32 %v654_v0, %v4014_v47  ;;  %v656_v3 = vpop.f32.mrb[13].mxu1 }
 0x63a   :  { %v660_v6 = vadd.f32 %v656_v3, %v4018_v51 }
 0x63b   :  { %v2839_v4 = vmul.f32 -1.442695, %v659_v1 }
 0x63c   :  { %v2840_v18 = vmul.f32 -1.442695, %v660_v6 }
 0x63d   :  { %3443 = vpow2.f32 %v2839_v4 }
 0x63e   :  { %3445 = vtanh.f32 %v660_v6 }
 0x647   :  { %v3444_v7 = vpop.eup %3443 }
 0x648   :  { %v667_v9 = vadd.f32 1.0, %v3444_v7  ;;  %v3446_v10 = vpop.eup %3445 }
 0x64a   :  { %3447 = vrcp.f32 %v667_v9 }
 0x64b   :  { %3449 = vpow2.f32 %v2840_v18 }
 0x654   :  { %v3448_v12 = vpop.eup %3447 }
 0x655   :  { %v678_v15 = vmul.f32 %v3448_v12, %v3446_v10  ;;  %v677_v16 = vmul.f32 %v3448_v12, %v675_v11  ;;  %v3450_v19 = vpop.eup %3449 }
 0x656   :  { %v668_v20 = vadd.f32 1.0, %v3450_v19 }
 0x657   :  { %680 = vrot.lane.b32.xlu0 %v678_v15, %s3706_s4 }
 0x658   :  { %3451 = vrcp.f32 %v668_v20 }
 0x662   :  { %v3452_v24 = vpop.eup %3451 }
 0x6c9   :  { %v681_v21 = vpop.permute.xlu0 %680 }
 0x6ca   :  { %v683_v22 = vadd.f32 %v681_v21, %v677_v16 }
 0x6cc   :  { %3453 = vtanh.f32 %v683_v22  ;;  %v784_v41 = vrot.slane %v683_v22, 4 }
 0x6d6   :  { %v3454_v25 = vpop.eup %3453 }
 0x6d7   :  { %v4067_v26 = vmul.f32 %v3454_v25, %v3452_v24 }
 0x6d9   :  { %687 = vrot.lane.b32.xlu1 %v4067_v26, %s3706_s4 }
 0x74b   :  { %v688_v27 = vpop.permute.xlu1 %687 }
 0x74c   :  { %2841 = vmatmul.mubr.msk.f32.vlgmr.msra.gmra.mrb[14].mxu1 %vm366_vm7, %v688_v27 }
 0x74d   :  { %3173 = vmatpush1.bf16.msra.mxu1 %v3895_v54  ;;  %976 = vmatprep.mubr.f32.mxu1 %v3705_v53 }
 0x74e   :  { %3175 = vmatprep.subr.bf16.mxu1 %v3907_v57 }
 0x751   :  { %3177 = vmatpush1.bf16.msra.mxu1 %v3915_v60 }
 0x752   :  { %3179 = vmatprep.subr.bf16.mxu1 %v3925_v63 }
 0x755   :  { %3181 = vmatpush1.bf16.msra.mxu1 %v3933_v2 }
 0x756   :  { %3183 = vmatprep.subr.bf16.mxu1 %v3943_v5 }
 0x759   :  { %3185 = vmatpush1.bf16.msra.mxu1 %v3951_v8 }
 0x75a   :  { %3203 = vmatprep.subr.bf16.mxu1 %v3886_v50 }
 0x81f   :  { %v757_v28 = vpop.f32.mrb[14].mxu1 }
 0x820   :  { %v764_v30 = vrot.slane %v757_v28, 4  ;;  %v759_v31 = vpop.f32.mrb[15].mxu1 }
 0x821   :  { %v765_v35 = vrot.slane %v759_v31, 4 }
 0x822   :  { %v768_v32 = vadd.f32 %v764_v30, %v4014_v47 }
 0x823   :  { %v769_v36 = vadd.f32 %v765_v35, %v4018_v51 }
 0x824   :  { %v2842_v33 = vmul.f32 -1.442695, %v768_v32 }
 0x825   :  { %v2843_v50 = vmul.f32 -1.442695, %v769_v36 }
 0x826   :  { %3455 = vpow2.f32 %v2842_v33 }
 0x827   :  { %3457 = vtanh.f32 %v769_v36 }
 0x830   :  { %v3456_v37 = vpop.eup %3455 }
 0x831   :  { %v776_v38 = vadd.f32 1.0, %v3456_v37  ;;  %v3458_v40 = vpop.eup %3457 }
 0x833   :  { %3459 = vrcp.f32 %v776_v38 }
 0x834   :  { %3461 = vpow2.f32 %v2843_v50 }
 0x83d   :  { %v3460_v44 = vpop.eup %3459 }
 0x83e   :  { %v787_v45 = vmul.f32 %v3460_v44, %v3458_v40  ;;  %v786_v46 = vmul.f32 %v3460_v44, %v784_v41  ;;  %v3462_v48 = vpop.eup %3461 }
 0x83f   :  { %v777_v47 = vadd.f32 1.0, %v3462_v48 }
 0x840   :  { %789 = vrot.lane.b32.xlu0 %v787_v45, %s3706_s4 }
 0x841   :  { %3463 = vrcp.f32 %v777_v47 }
 0x84b   :  { %v3464_v51 = vpop.eup %3463 }
 0x8b2   :  { %v790_v49 = vpop.permute.xlu0 %789 }
 0x8b3   :  { %v792_v52 = vadd.f32 %v790_v49, %v786_v46 }
 0x8b5   :  { %3465 = vtanh.f32 %v792_v52  ;;  %v896_v15 = vrot.slane %v792_v52, 4 }
 0x8bf   :  { %v3466_v56 = vpop.eup %3465 }
 0x8c0   :  { %v4084_v62 = vmul.f32 %v3466_v56, %v3464_v51 }
 0x8c2   :  { %v804_v0 = vrot.slane %v4084_v62, 4 }
 0x8c4   :  { %805 = vrot.lane.b32.xlu1 %v804_v0, %s3706_s4 }
 0x936   :  { %v806_v1 = vpop.permute.xlu1 %805 }
 0x937   :  { %2844 = vmatmul.mubr.msk.f32.vlgmr.msra.gmra.mrb[4].mxu0 %vm366_vm7, %v806_v1 }
 0x938   :  { %3189 = vmatpush1.bf16.msra.mxu0 %v3895_v54  ;;  %1094 = vmatprep.mubr.f32.mxu0 %v3705_v53 }
 0x939   :  { %3191 = vmatprep.subr.bf16.mxu0 %v3907_v57 }
 0x93c   :  { %3193 = vmatpush1.bf16.msra.mxu0 %v3915_v60 }
 0x93d   :  { %3195 = vmatprep.subr.bf16.mxu0 %v3925_v63 }
 0x940   :  { %3197 = vmatpush1.bf16.msra.mxu0 %v3933_v2 }
 0x941   :  { %3199 = vmatprep.subr.bf16.mxu0 %v3943_v5 }
 0x944   :  { %3201 = vmatpush1.bf16.msra.mxu0 %v3951_v8 }
 0xa0a   :  { %v875_v3 = vpop.f32.mrb[4].mxu0 }
 0xa0b   :  { %v880_v4 = vadd.f32 %v875_v3, %v4006_v39  ;;  %v877_v6 = vpop.f32.mrb[5].mxu0 }
 0xa0c   :  { %v881_v9 = vadd.f32 %v877_v6, %v4010_v43 }
 0xa0d   :  { %v2845_v7 = vmul.f32 -1.442695, %v880_v4 }
 0xa0e   :  { %v2846_v20 = vmul.f32 -1.442695, %v881_v9 }
 0xa0f   :  { %3467 = vpow2.f32 %v2845_v7 }
 0xa10   :  { %3469 = vtanh.f32 %v881_v9 }
 0xa19   :  { %v3468_v10 = vpop.eup %3467 }
 0xa1a   :  { %v888_v11 = vadd.f32 1.0, %v3468_v10  ;;  %v3470_v12 = vpop.eup %3469 }
 0xa1c   :  { %3471 = vrcp.f32 %v888_v11 }
 0xa1d   :  { %3473 = vpow2.f32 %v2846_v20 }
 0xa26   :  { %v3472_v16 = vpop.eup %3471 }
 0xa27   :  { %v899_v18 = vmul.f32 %v3472_v16, %v3470_v12  ;;  %v898_v19 = vmul.f32 %v3472_v16, %v896_v15  ;;  %v3474_v21 = vpop.eup %3473 }
 0xa28   :  { %v889_v22 = vadd.f32 1.0, %v3474_v21 }
 0xa29   :  { %901 = vrot.lane.b32.xlu0 %v899_v18, %s3706_s4 }
 0xa2a   :  { %3475 = vrcp.f32 %v889_v22 }
 0xa34   :  { %v3476_v27 = vpop.eup %3475 }
 0xa9b   :  { %v902_v24 = vpop.permute.xlu0 %901 }
 0xa9c   :  { %v904_v25 = vadd.f32 %v902_v24, %v898_v19 }
 0xa9e   :  { %3477 = vtanh.f32 %v904_v25 }
 0xaa8   :  { %v3478_v28 = vpop.eup %3477 }
 0xaa9   :  { %v4102_v30 = vmul.f32 %v3478_v28, %v3476_v27  ;;  %v1239_v27 = vsel %vm1237_vm8, %v4067_v26, %v4084_v62 }
 0xaab   :  { %908 = vrot.lane.b32.xlu1 %v4102_v30, %s3706_s4 }
 0xb1d   :  { %v909_v31 = vpop.permute.xlu1 %908 }
 0xb1e   :  { %2847 = vmatmul.mubr.msk.f32.vlgmr.msra.gmra.mrb[16].mxu1 %vm366_vm7, %v909_v31 }
 0xb1f   :  { %3205 = vmatpush1.bf16.msra.mxu1 %v3895_v54  ;;  %1197 = vmatprep.mubr.f32.mxu1 %v3705_v53 }
 0xb20   :  { %3207 = vmatprep.subr.bf16.mxu1 %v3907_v57 }
 0xb23   :  { %3209 = vmatpush1.bf16.msra.mxu1 %v3915_v60 }
 0xb24   :  { %3211 = vmatprep.subr.bf16.mxu1 %v3925_v63 }
 0xb27   :  { %3213 = vmatpush1.bf16.msra.mxu1 %v3933_v2  ;;  %v1005_v2 = vrot.slane %v904_v25, 4  ;;  %v1238_v25 = vsel %vm1237_vm8, %v4033_v23, %v4048_v58 }
 0xb28   :  { %3215 = vmatprep.subr.bf16.mxu1 %v3943_v5 }
 0xb2b   :  { %3217 = vmatpush1.bf16.msra.mxu1 %v3951_v8 }
 0xbf1   :  { %v978_v32 = vpop.f32.mrb[16].mxu1 }
 0xbf2   :  { %v985_v33 = vrot.slane %v978_v32, 4  ;;  %v980_v35 = vpop.f32.mrb[17].mxu1 }
 0xbf3   :  { %v986_v37 = vrot.slane %v980_v35, 4 }
 0xbf4   :  { %v989_v36 = vadd.f32 %v985_v33, %v4006_v39 }
 0xbf5   :  { %v990_v57 = vadd.f32 %v986_v37, %v4010_v43 }
 0xbf6   :  { %v2848_v54 = vmul.f32 -1.442695, %v989_v36 }
 0xbf7   :  { %v2849_v8 = vmul.f32 -1.442695, %v990_v57 }
 0xbf8   :  { %3479 = vpow2.f32 %v2848_v54 }
 0xbf9   :  { %3481 = vtanh.f32 %v990_v57 }
 0xc02   :  { %v3480_v38 = vpop.eup %3479 }
 0xc03   :  { %v997_v60 = vadd.f32 1.0, %v3480_v38  ;;  %v3482_v63 = vpop.eup %3481 }
 0xc05   :  { %3483 = vrcp.f32 %v997_v60 }
 0xc06   :  { %3485 = vpow2.f32 %v2849_v8  ;;  %v1299_v8 = vld [vmem:[%s4533_s5 + $0x18] sm:$0xff] }
 0xc0f   :  { %v3484_v40 = vpop.eup %3483 }
 0xc10   :  { %v1008_v5 = vmul.f32 %v3484_v40, %v3482_v63  ;;  %v1007_v41 = vmul.f32 %v3484_v40, %v1005_v2  ;;  %v3486_v44 = vpop.eup %3485 }
 0xc11   :  { %v998_v39 = vadd.f32 1.0, %v3486_v44 }
 0xc12   :  { %1010 = vrot.lane.b32.xlu0 %v1008_v5, %s3706_s4 }
 0xc13   :  { %3487 = vrcp.f32 %v998_v39  ;;  %v1298_v39 = vld [vmem:[%s4533_s5 + $0x10] sm:$0xff] }
 0xc1d   :  { %v3488_v43 = vpop.eup %3487 }
 0xc84   :  { %v1011_v45 = vpop.permute.xlu0 %1010 }
 0xc85   :  { %v1013_v46 = vadd.f32 %v1011_v45, %v1007_v41  ;;  %v1301_v45 = vld [vmem:[%s4533_s5 + $0x28] sm:$0xff] }
 0xc87   :  { %3489 = vtanh.f32 %v1013_v46  ;;  %v1117_v9 = vrot.slane %v1013_v46, 4  ;;  %v1303_v46 = vld [vmem:[%s4533_s5 + $0x38] sm:$0xff] }
 0xc91   :  { %v3490_v50 = vpop.eup %3489 }
 0xc92   :  { %v4118_v48 = vmul.f32 %v3490_v50, %v3488_v43  ;;  %v3222_v50 = vpack.c.bf16 %v1303_v46, %v1301_v45  ;;  %v1438_v46 = vld [vmem:[#allocation2 + $0x68] sm:$0xff] }
 0xc94   :  { %v1025_v47 = vrot.slane %v4118_v48, 4  ;;  %v1240_v28 = vsel %vm1237_vm8, %v4102_v30, %v4118_v48  ;;  %v1254_v48 = vrot.slane %v4033_v23, 4 }
 0xc96   :  { %1026 = vrot.lane.b32.xlu1 %v1025_v47, %s3706_s4 }
 0xd08   :  { %v1027_v49 = vpop.permute.xlu1 %1026 }
 0xd09   :  { %2850 = vmatmul.mubr.msk.f32.vlgmr.msra.gmra.mrb[6].mxu0 %vm366_vm7, %v1027_v49  ;;  %v1300_v49 = vld [vmem:[%s4533_s5 + $0x20] sm:$0xff] }
 0xd0a   :  { %1400 = vmatprep.mubr.f32.mxu0 %v3705_v53 }
 0xddc   :  { %v1096_v52 = vpop.f32.mrb[6].mxu0 }
 0xddd   :  { %v1101_v51 = vadd.f32 %v1096_v52, %v4022_v55  ;;  %v1098_v56 = vpop.f32.mrb[7].mxu0  ;;  %v1302_v52 = vld [vmem:[%s4533_s5 + $0x30] sm:$0xff] }
 0xdde   :  { %v1102_v3 = vadd.f32 %v1098_v56, %v4026_v59  ;;  %v1307_v56 = vld [vmem:[%s4533_s5 + $0x58] sm:$0xff] }
 0xddf   :  { %v2851_v1 = vmul.f32 -1.442695, %v1101_v51  ;;  %v1305_v51 = vld [vmem:[%s4533_s5 + $0x48] sm:$0xff] }
 0xde0   :  { %v2852_v15 = vmul.f32 -1.442695, %v1102_v3 }
 0xde1   :  { %3491 = vpow2.f32 %v2851_v1  ;;  %v3224_v1 = vpack.c.bf16 %v1302_v52, %v1300_v49  ;;  %v1437_v49 = vld [vmem:[#allocation2 + $0x60] sm:$0xff]  ;;  %v1439_v52 = vld [vmem:[#allocation2 + $0x70] sm:$0xff] }
 0xde2   :  { %3493 = vtanh.f32 %v1102_v3  ;;  %v3226_v3 = vpack.c.bf16 %v1307_v56, %v1305_v51  ;;  %v4224_v56 = vpack.c.bf16 %v1439_v52, %v1437_v49 }
 0xdeb   :  { %v3492_v4 = vpop.eup %3491 }
 0xdec   :  { %v1109_v6 = vadd.f32 1.0, %v3492_v4  ;;  %v3494_v7 = vpop.eup %3493  ;;  %v1304_v4 = vld [vmem:[%s4533_s5 + $0x40] sm:$0xff] }
 0xdee   :  { %3495 = vrcp.f32 %v1109_v6  ;;  %v1306_v6 = vld [vmem:[%s4533_s5 + $0x50] sm:$0xff] }
 0xdef   :  { %3497 = vpow2.f32 %v2852_v15 }
 0xdf8   :  { %v3496_v10 = vpop.eup %3495 }
 0xdf9   :  { %v1120_v11 = vmul.f32 %v3496_v10, %v3494_v7  ;;  %v1119_v12 = vmul.f32 %v3496_v10, %v1117_v9  ;;  %v3498_v16 = vpop.eup %3497  ;;  %v1309_v7 = vld [vmem:[%s4533_s5 + $0x68] sm:$0xff]  ;;  %v1311_v9 = vld [vmem:[%s4533_s5 + $0x78] sm:$0xff]  ;;  %v3228_v10 = vpack.c.bf16 %v1306_v6, %v1304_v4 }
 0xdfa   :  { %v1110_v18 = vadd.f32 1.0, %v3498_v16 }
 0xdfb   :  { %1122 = vrot.lane.b32.xlu0 %v1120_v11, %s3706_s4  ;;  %v3230_v11 = vpack.c.bf16 %v1311_v9, %v1309_v7 }
 0xdfc   :  { %3499 = vrcp.f32 %v1110_v18 }
 0xe06   :  { %v3500_v21 = vpop.eup %3499 }
 0xe6d   :  { %v1123_v19 = vpop.permute.xlu0 %1122 }
 0xe6e   :  { %v1125_v20 = vadd.f32 %v1123_v19, %v1119_v12 }
 0xe70   :  { %3501 = vtanh.f32 %v1125_v20  ;;  %v1226_v2 = vrot.slane %v1125_v20, 4  ;;  %v1308_v20 = vld [vmem:[%s4533_s5 + $0x60] sm:$0xff] }
 0xe7a   :  { %v3502_v22 = vpop.eup %3501 }
 0xe7b   :  { %v4129_v24 = vmul.f32 %v3502_v22, %v3500_v21  ;;  %v1310_v21 = vld [vmem:[%s4533_s5 + $0x70] sm:$0xff] }
 0xe7c   :  { %v3232_v22 = vpack.c.bf16 %v1310_v21, %v1308_v20 }
 0xe7d   :  { %1129 = vrot.lane.b32.xlu1 %v4129_v24, %s3706_s4  ;;  %v1245_v45 = vrot.slane %v4129_v24, 4 }
 0xe81   :  { %1264 = vrot.lane.b32.xlu1 %v1238_v25, %s3706_s4  ;;  %v1426_v25 = vld [vmem:[#allocation2 + $0x8] sm:$0xff] }
 0xe85   :  { %1266 = vrot.lane.b32.xlu1 %v1239_v27, %s3706_s4  ;;  %v1428_v27 = vld [vmem:[#allocation2 + $0x18] sm:$0xff] }
 0xe89   :  { %1268 = vrot.lane.b32.xlu1 %v1240_v28, %s3706_s4  ;;  %v4198_v28 = vpack.c.bf16 %v1428_v27, %v1426_v25 }
 0xe8b   :  { %3235 = vmatprep.subr.bf16.mxu1 %v4198_v28 }
 0xeef   :  { %v1130_v31 = vpop.permute.xlu1 %1129 }
 0xef0   :  { %2853 = vmatmul.mubr.msk.f32.vlgmr.msra.gmra.mrb[18].mxu1 %vm366_vm7, %v1130_v31  ;;  %v1425_v31 = vld [vmem:[#allocation2] sm:$0xff] }
 0xef1   :  { %1513 = vmatprep.mubr.f32.mxu1 %v3705_v53 }
 0xef3   :  { %v1265_v62 = vpop.permute.xlu1 %1264 }
 0xfc3   :  { %v1199_v32 = vpop.f32.mrb[18].mxu1 }
 0xfc4   :  { %v1206_v33 = vrot.slane %v1199_v32, 4  ;;  %v1201_v35 = vpop.f32.mrb[19].mxu1  ;;  %v1427_v32 = vld [vmem:[#allocation2 + $0x10] sm:$0xff] }
 0xfc5   :  { %v1207_v37 = vrot.slane %v1201_v35, 4  ;;  %v1430_v35 = vld [vmem:[#allocation2 + $0x28] sm:$0xff] }
 0xfc6   :  { %v1210_v36 = vadd.f32 %v1206_v33, %v4022_v55  ;;  %v1297_v55 = vld [vmem:[%s4533_s5 + $0x8] sm:$0xff]  ;;  %v4200_v33 = vpack.c.bf16 %v1427_v32, %v1425_v31 }
 0xfc7   :  { %v1211_v57 = vadd.f32 %v1207_v37, %v4026_v59  ;;  %v1296_v59 = vld [vmem:[%s4533_s5] sm:$0xff]  ;;  %v3218_v44 = vpack.c.bf16 %v1299_v8, %v1297_v55  ;;  %v1435_v55 = vld [vmem:[#allocation2 + $0x50] sm:$0xff] }
 0xfc8   :  { %v2854_v54 = vmul.f32 -1.442695, %v1210_v36  ;;  %v3220_v43 = vpack.c.bf16 %v1298_v39, %v1296_v59  ;;  %3237 = vmatpush1.bf16.msra.mxu1 %v4200_v33  ;;  %v1432_v36 = vld [vmem:[#allocation2 + $0x38] sm:$0xff]  ;;  %v1429_v37 = vld [vmem:[#allocation2 + $0x20] sm:$0xff] }
 0xfc9   :  { %3219 = vmatprep.subr.bf16.mxu0 %v3218_v44  ;;  %v2855_v12 = vmul.f32 -1.442695, %v1211_v57 }
 0xfca   :  { %3503 = vpow2.f32 %v2854_v54  ;;  %3221 = vmatpush1.bf16.msra.mxu0 %v3220_v43  ;;  %v4205_v54 = vpack.c.bf16 %v1432_v36, %v1430_v35  ;;  %v1440_v43 = vld [vmem:[#allocation2 + $0x78] sm:$0xff] }
 0xfcb   :  { %3505 = vtanh.f32 %v1211_v57  ;;  %3223 = vmatprep.subr.bf16.mxu0 %v3222_v50  ;;  %v1431_v57 = vld [vmem:[#allocation2 + $0x30] sm:$0xff]  ;;  %v4221_v50 = vpack.c.bf16 %v1440_v43, %v1438_v46 }
 0xfcc   :  { %3239 = vmatprep.subr.bf16.mxu1 %v4205_v54 }
 0xfce   :  { %3225 = vmatpush1.bf16.msra.mxu0 %v3224_v1 }
 0xfcf   :  { %3227 = vmatprep.subr.bf16.mxu0 %v3226_v3  ;;  %v1251_v3 = vrot.slane %v4067_v26, 4  ;;  %v1259_v26 = vsel %vm1237_vm8, %v583_v61, %v1254_v48 }
 0xfd2   :  { %3229 = vmatpush1.bf16.msra.mxu0 %v3228_v10 }
 0xfd3   :  { %3231 = vmatprep.subr.bf16.mxu0 %v3230_v11 }
 0xfd4   :  { %v3504_v38 = vpop.eup %3503 }
 0xfd5   :  { %v1218_v60 = vadd.f32 1.0, %v3504_v38  ;;  %v3506_v63 = vpop.eup %3505  ;;  %v4207_v38 = vpack.c.bf16 %v1431_v57, %v1429_v37 }
 0xfd6   :  { %3233 = vmatpush1.bf16.msra.mxu0 %v3232_v22 }
 0xfd7   :  { %3507 = vrcp.f32 %v1218_v60  ;;  %3251 = vmatprep.subr.bf16.mxu0 %v4198_v28  ;;  %3241 = vmatpush1.bf16.msra.mxu1 %v4207_v38 }
 0xfd8   :  { %3509 = vpow2.f32 %v2855_v12 }
 0xfe1   :  { %v3508_v40 = vpop.eup %3507 }
 0xfe2   :  { %v1229_v5 = vmul.f32 %v3508_v40, %v3506_v63  ;;  %v1228_v41 = vmul.f32 %v3508_v40, %v1226_v2  ;;  %v3510_v15 = vpop.eup %3509  ;;  %v1434_v63 = vld [vmem:[#allocation2 + $0x48] sm:$0xff]  ;;  %v1436_v2 = vld [vmem:[#allocation2 + $0x58] sm:$0xff] }
 0xfe3   :  { %v1219_v16 = vadd.f32 1.0, %v3510_v15 }
 0xfe4   :  { %1231 = vrot.lane.b32.xlu0 %v1229_v5, %s3706_s4  ;;  %v4211_v5 = vpack.c.bf16 %v1436_v2, %v1434_v63 }
 0xfe5   :  { %3511 = vrcp.f32 %v1219_v16  ;;  %v1312_v16 = vld [vmem:[#allocation5] sm:$0x3] }
 0xfe6   :  { %3243 = vmatprep.subr.bf16.mxu1 %v4211_v5  ;;  %v1317_v20 = vrot.slane %v1312_v16, %v232_v14  ;;  %v1321_v21 = vrot.slane %v1312_v16, %v236_v17 }
 0xfef   :  { %v3512_v60 = vpop.eup %3511 }
0x1056   :  { %v1232_v18 = vpop.permute.xlu0 %1231 }
0x1057   :  { %v1234_v19 = vadd.f32 %v1232_v18, %v1228_v41  ;;  %v1433_v41 = vld [vmem:[#allocation2 + $0x40] sm:$0xff] }
0x1058   :  { %v4213_v59 = vpack.c.bf16 %v1435_v55, %v1433_v41 }
0x1059   :  { %3513 = vtanh.f32 %v1234_v19 }
0x105a   :  { %3245 = vmatpush1.bf16.msra.mxu1 %v4213_v59 }
0x105b   :  { %3247 = vmatprep.subr.bf16.mxu1 %v4221_v50 }
0x105e   :  { %3249 = vmatpush1.bf16.msra.mxu1 %v4224_v56 }
0x105f   :  { %3267 = vmatprep.subr.bf16.mxu1 %v4198_v28 }
0x1061   :  { %1514 = vmatmul.mubr.f32.vlgmr.msra.gmra.mrb[20].mxu1 %v3705_v53 }
0x1062   :  { %3269 = vmatpush1.bf16.msra.mxu1 %v4200_v33  ;;  %1731 = vmatprep.mubr.f32.mxu1 %v3705_v53 }
0x1063   :  { %v3514_v40 = vpop.eup %3513  ;;  %3271 = vmatprep.subr.bf16.mxu1 %v4205_v54 }
0x1064   :  { %v1236_v8 = vmul.f32 %v3514_v40, %v3512_v60 }
0x1066   :  { %v1241_v44 = vsel %vm1237_vm8, %v4129_v24, %v1236_v8  ;;  %v1243_v39 = vrot.slane %v1236_v8, 4  ;;  %v1248_v24 = vrot.slane %v4102_v30, 4  ;;  %v1258_v30 = vsel %vm1237_vm8, %v804_v0, %v1251_v3  ;;  %3273 = vmatpush1.bf16.msra.mxu1 %v4207_v38 }
0x1067   :  { %1270 = vrot.lane.b32.xlu1 %v1241_v44, %s3706_s4  ;;  %3275 = vmatprep.subr.bf16.mxu1 %v4211_v5 }
0x1068   :  { %v1256_v51 = vsel %vm1237_vm8, %v1243_v39, %v1245_v45  ;;  %v1257_v1 = vsel %vm1237_vm8, %v1025_v47, %v1248_v24  ;;  %v1267_v47 = vpop.permute.xlu1 %1266 }
0x1069   :  { %1280 = vrot.lane.b32.xlu0 %v1256_v51, %s3706_s4 }
0x106a   :  { %3277 = vmatpush1.bf16.msra.mxu1 %v4213_v59 }
0x106b   :  { %3279 = vmatprep.subr.bf16.mxu1 %v4221_v50 }
0x106c   :  { %v1269_v4 = vpop.permute.xlu1 %1268 }
0x106d   :  { %1282 = vrot.lane.b32.xlu0 %v1257_v1, %s3706_s4 }
0x106e   :  { %3281 = vmatpush1.bf16.msra.mxu1 %v4224_v56 }
0x106f   :  { %3299 = vmatprep.subr.bf16.mxu1 %v4198_v28 }
0x1071   :  { %1284 = vrot.lane.b32.xlu0 %v1258_v30, %s3706_s4 }
0x1075   :  { %1286 = vrot.lane.b32.xlu0 %v1259_v26, %s3706_s4 }
0x10d9   :  { %v1271_v9 = vpop.permute.xlu1 %1270 }
0x10db   :  { %v1281_v23 = vpop.permute.xlu0 %1280 }
0x10dc   :  { %v1292_v0 = vsel %vm240_vm4, %v1265_v62, %v1281_v23 }
0x10dd   :  { %2856 = vmatmul.mubr.msk.f32.vlgmr.msra.gmra.mrb[8].mxu0 %vm366_vm7, %v1292_v0 }
0x10de   :  { %1406 = vmatprep.mubr.f32.mxu0 %v3705_v53  ;;  %3253 = vmatpush1.bf16.msra.mxu0 %v4200_v33 }
0x10df   :  { %v1283_v58 = vpop.permute.xlu0 %1282  ;;  %3255 = vmatprep.subr.bf16.mxu0 %v4205_v54 }
0x10e0   :  { %v1293_v61 = vsel %vm240_vm4, %v1267_v47, %v1283_v58 }
0x10e1   :  { %2857 = vmatmul.mubr.msk.f32.gmra.mrb[10].mxu0 %vm366_vm7, %v1293_v61 }
0x10e2   :  { %1412 = vmatprep.mubr.f32.mxu0 %v3705_v53  ;;  %3257 = vmatpush1.bf16.msra.mxu0 %v4207_v38 }
0x10e3   :  { %v1285_v6 = vpop.permute.xlu0 %1284  ;;  %3259 = vmatprep.subr.bf16.mxu0 %v4211_v5 }
0x10e4   :  { %v1294_v7 = vsel %vm240_vm4, %v1269_v4, %v1285_v6 }
0x10e5   :  { %2858 = vmatmul.mubr.msk.f32.gmra.mrb[12].mxu0 %vm366_vm7, %v1294_v7 }
0x10e6   :  { %1418 = vmatprep.mubr.f32.mxu0 %v3705_v53  ;;  %3261 = vmatpush1.bf16.msra.mxu0 %v4213_v59 }
0x10e7   :  { %v1287_v10 = vpop.permute.xlu0 %1286  ;;  %3263 = vmatprep.subr.bf16.mxu0 %v4221_v50 }
0x10e8   :  { %v1295_v11 = vsel %vm240_vm4, %v1271_v9, %v1287_v10 }
0x10e9   :  { %2859 = vmatmul.mubr.msk.f32.gmra.mrb[14].mxu0 %vm366_vm7, %v1295_v11 }
0x10ea   :  { %3265 = vmatpush1.bf16.msra.mxu0 %v4224_v56  ;;  %1613 = vmatprep.mubr.f32.mxu0 %v3705_v53 }
0x10eb   :  { %3283 = vmatprep.subr.bf16.mxu0 %v4198_v28 }
0x1134   :  { %v1515_v12 = vpop.f32.mrb[20].mxu1 }
0x1135   :  { %v1517_v15 = vpop.f32.mrb[21].mxu1 }
0x11b0   :  { %v1402_v18 = vpop.f32.mrb[8].mxu0 }
0x11b1   :  { %v1404_v19 = vpop.f32.mrb[9].mxu0  ;;  %v1403_v35 = vadd.f32 %v1402_v18, %v1317_v20 }
0x11b2   :  { %v1405_v60 = vadd.f32 %v1404_v19, %v1321_v21 }
0x11b3   :  { %v2097_v8 = vrot.slane %v1403_v35, 4 }
0x11b4   :  { %v1408_v22 = vpop.f32.mrb[10].mxu0  ;;  %v2098_v46 = vrot.slane %v1405_v60, 4 }
0x11b5   :  { %v1409_v25 = vadd.f32 %v1408_v22, %v1317_v20  ;;  %v1410_v27 = vpop.f32.mrb[11].mxu0 }
0x11b6   :  { %v1411_v31 = vadd.f32 %v1410_v27, %v1321_v21 }
0x11b7   :  { %v1876_v36 = vrot.slane %v1409_v25, 4 }
0x11b8   :  { %v1414_v32 = vpop.f32.mrb[12].mxu0  ;;  %v1877_v63 = vrot.slane %v1411_v31, 4 }
0x11b9   :  { %v1415_v37 = vadd.f32 %v1414_v32, %v1317_v20  ;;  %v1416_v57 = vpop.f32.mrb[13].mxu0 }
0x11ba   :  { %v1417_v2 = vadd.f32 %v1416_v57, %v1321_v21 }
0x11bb   :  { %v1655_v40 = vrot.slane %v1415_v37, 4  ;;  %v4281_v41 = vsel %vm3996_vm5, %v1415_v37, %v1876_v36 }
0x11bc   :  { %v1656_v14 = vrot.slane %v1417_v2, 4  ;;  %v1420_v55 = vpop.f32.mrb[14].mxu0  ;;  %v4285_v17 = vsel %vm4000_vm6, %v1417_v2, %v1877_v63 }
0x11bd   :  { %v1421_v44 = vadd.f32 %v1420_v55, %v1317_v20  ;;  %v1422_v39 = vpop.f32.mrb[15].mxu0  ;;  %v4289_v45 = vsel %vm3996_vm5, %v1409_v25, %v1655_v40 }
0x11be   :  { %v1423_v43 = vadd.f32 %v1422_v39, %v1321_v21  ;;  %v4293_v49 = vsel %vm4000_vm6, %v1411_v31, %v1656_v14 }
0x11bf   :  { %v1443_v52 = vrot.slane %v1421_v44, 4  ;;  %v4297_v51 = vsel %vm3996_vm5, %v1421_v44, %v2097_v8 }
0x11c0   :  { %v1444_v24 = vrot.slane %v1423_v43, 4  ;;  %v4301_v1 = vsel %vm4000_vm6, %v1423_v43, %v2098_v46 }
0x11c1   :  { %v1447_v3 = vsel %vm3996_vm5, %v1403_v35, %v1443_v52 }
0x11c2   :  { %v1520_v30 = vadd.f32 %v1515_v12, %v1447_v3  ;;  %v1448_v48 = vsel %vm4000_vm6, %v1405_v60, %v1444_v24 }
0x11c3   :  { %v1521_v62 = vadd.f32 %v1517_v15, %v1448_v48 }
0x11c4   :  { %v2860_v26 = vmul.f32 -1.442695, %v1520_v30 }
0x11c5   :  { %v2861_v4 = vmul.f32 -1.442695, %v1521_v62 }
0x11c6   :  { %3515 = vpow2.f32 %v2860_v26 }
0x11c7   :  { %3517 = vtanh.f32 %v1521_v62 }
0x11d0   :  { %v3516_v23 = vpop.eup %3515 }
0x11d1   :  { %v1528_v0 = vadd.f32 1.0, %v3516_v23  ;;  %v3518_v47 = vpop.eup %3517 }
0x11d3   :  { %3519 = vrcp.f32 %v1528_v0 }
0x11d4   :  { %3521 = vpow2.f32 %v2861_v4 }
0x11dd   :  { %v3520_v58 = vpop.eup %3519 }
0x11de   :  { %v1536_v61 = vmul.f32 %v3520_v58, %v3518_v47  ;;  %v3522_v29 = vpop.eup %3521  ;;  %v1535_v7 = vmul.f32 0.0, %v3520_v58 }
0x11df   :  { %v1529_v6 = vadd.f32 1.0, %v3522_v29 }
0x11e0   :  { %1538 = vrot.lane.b32.xlu1 %v1536_v61, %s3706_s4 }
0x11e1   :  { %3523 = vrcp.f32 %v1529_v6 }
0x11eb   :  { %v3524_v10 = vpop.eup %3523 }
0x1252   :  { %v1539_v9 = vpop.permute.xlu1 %1538 }
0x1253   :  { %v1541_v34 = vadd.f32 %v1539_v9, %v1535_v7 }
0x1255   :  { %3525 = vtanh.f32 %v1541_v34  ;;  %v1642_v35 = vrot.slane %v1541_v34, 4 }
0x125f   :  { %v3526_v11 = vpop.eup %3525 }
0x1260   :  { %v4308_v12 = vmul.f32 %v3526_v11, %v3524_v10 }
0x1262   :  { %1545 = vrot.lane.b32.xlu0 %v4308_v12, %s3706_s4 }
0x12d4   :  { %v1546_v15 = vpop.permute.xlu0 %1545 }
0x12d5   :  { %2862 = vmatmul.mubr.msk.f32.vlgmr.msra.gmra.mrb[16].mxu0 %vm366_vm7, %v1546_v15 }
0x12d6   :  { %3285 = vmatpush1.bf16.msra.mxu0 %v4200_v33  ;;  %1834 = vmatprep.mubr.f32.mxu0 %v3705_v53 }
0x12d7   :  { %3287 = vmatprep.subr.bf16.mxu0 %v4205_v54 }
0x12da   :  { %3289 = vmatpush1.bf16.msra.mxu0 %v4207_v38 }
0x12db   :  { %3291 = vmatprep.subr.bf16.mxu0 %v4211_v5 }
0x12de   :  { %3293 = vmatpush1.bf16.msra.mxu0 %v4213_v59 }
0x12df   :  { %3295 = vmatprep.subr.bf16.mxu0 %v4221_v50 }
0x12e2   :  { %3297 = vmatpush1.bf16.msra.mxu0 %v4224_v56 }
0x12e3   :  { %3315 = vmatprep.subr.bf16.mxu0 %v4198_v28 }
0x13a8   :  { %v1615_v16 = vpop.f32.mrb[16].mxu0 }
0x13a9   :  { %v1622_v18 = vrot.slane %v1615_v16, 4  ;;  %v1617_v19 = vpop.f32.mrb[17].mxu0 }
0x13aa   :  { %v1623_v22 = vrot.slane %v1617_v19, 4 }
0x13ab   :  { %v1626_v20 = vadd.f32 %v1622_v18, %v1447_v3 }
0x13ac   :  { %v1627_v25 = vadd.f32 %v1623_v22, %v1448_v48 }
0x13ad   :  { %v2863_v21 = vmul.f32 -1.442695, %v1626_v20 }
0x13ae   :  { %v2864_v60 = vmul.f32 -1.442695, %v1627_v25 }
0x13af   :  { %3527 = vpow2.f32 %v2863_v21 }
0x13b0   :  { %3529 = vtanh.f32 %v1627_v25 }
0x13b9   :  { %v3528_v27 = vpop.eup %3527 }
0x13ba   :  { %v1634_v31 = vadd.f32 1.0, %v3528_v27  ;;  %v3530_v32 = vpop.eup %3529 }
0x13bc   :  { %3531 = vrcp.f32 %v1634_v31 }
0x13bd   :  { %3533 = vpow2.f32 %v2864_v60 }
0x13c6   :  { %v3532_v36 = vpop.eup %3531 }
0x13c7   :  { %v1645_v37 = vmul.f32 %v3532_v36, %v3530_v32  ;;  %v1644_v57 = vmul.f32 %v3532_v36, %v1642_v35  ;;  %v3534_v63 = vpop.eup %3533 }
0x13c8   :  { %v1635_v2 = vadd.f32 1.0, %v3534_v63 }
0x13c9   :  { %1647 = vrot.lane.b32.xlu1 %v1645_v37, %s3706_s4 }
0x13ca   :  { %3535 = vrcp.f32 %v1635_v2 }
0x13d4   :  { %v3536_v55 = vpop.eup %3535 }
0x143b   :  { %v1648_v40 = vpop.permute.xlu1 %1647 }
0x143c   :  { %v1650_v14 = vadd.f32 %v1648_v40, %v1644_v57 }
0x143e   :  { %3537 = vtanh.f32 %v1650_v14  ;;  %v1754_v23 = vrot.slane %v1650_v14, 4 }
0x1448   :  { %v3538_v8 = vpop.eup %3537 }
0x1449   :  { %v4323_v44 = vmul.f32 %v3538_v8, %v3536_v55 }
0x144b   :  { %v1662_v39 = vrot.slane %v4323_v44, 4 }
0x144d   :  { %1663 = vrot.lane.b32.xlu0 %v1662_v39, %s3706_s4 }
0x14bf   :  { %v1664_v46 = vpop.permute.xlu0 %1663 }
0x14c0   :  { %2865 = vmatmul.mubr.msk.f32.vlgmr.msra.gmra.mrb[22].mxu1 %vm366_vm7, %v1664_v46 }
0x14c1   :  { %3301 = vmatpush1.bf16.msra.mxu1 %v4200_v33  ;;  %1952 = vmatprep.mubr.f32.mxu1 %v3705_v53 }
0x14c2   :  { %3303 = vmatprep.subr.bf16.mxu1 %v4205_v54 }
0x14c5   :  { %3305 = vmatpush1.bf16.msra.mxu1 %v4207_v38 }
0x14c6   :  { %3307 = vmatprep.subr.bf16.mxu1 %v4211_v5 }
0x14c9   :  { %3309 = vmatpush1.bf16.msra.mxu1 %v4213_v59 }
0x14ca   :  { %3311 = vmatprep.subr.bf16.mxu1 %v4221_v50 }
0x14cd   :  { %3313 = vmatpush1.bf16.msra.mxu1 %v4224_v56 }
0x14ce   :  { %3331 = vmatprep.subr.bf16.mxu1 %v4198_v28 }
0x1593   :  { %v1733_v43 = vpop.f32.mrb[22].mxu1 }
0x1594   :  { %v1738_v52 = vadd.f32 %v1733_v43, %v4289_v45  ;;  %v1735_v24 = vpop.f32.mrb[23].mxu1 }
0x1595   :  { %v1739_v30 = vadd.f32 %v1735_v24, %v4293_v49 }
0x1596   :  { %v2866_v3 = vmul.f32 -1.442695, %v1738_v52 }
0x1597   :  { %v2867_v61 = vmul.f32 -1.442695, %v1739_v30 }
0x1598   :  { %3539 = vpow2.f32 %v2866_v3 }
0x1599   :  { %3541 = vtanh.f32 %v1739_v30 }
0x15a2   :  { %v3540_v48 = vpop.eup %3539 }
0x15a3   :  { %v1746_v26 = vadd.f32 1.0, %v3540_v48  ;;  %v3542_v62 = vpop.eup %3541 }
0x15a5   :  { %3543 = vrcp.f32 %v1746_v26 }
0x15a6   :  { %3545 = vpow2.f32 %v2867_v61 }
0x15af   :  { %v3544_v0 = vpop.eup %3543 }
0x15b0   :  { %v1757_v47 = vmul.f32 %v3544_v0, %v3542_v62  ;;  %v1756_v58 = vmul.f32 %v3544_v0, %v1754_v23  ;;  %v3546_v4 = vpop.eup %3545 }
0x15b1   :  { %v1747_v29 = vadd.f32 1.0, %v3546_v4 }
0x15b2   :  { %1759 = vrot.lane.b32.xlu1 %v1757_v47, %s3706_s4 }
0x15b3   :  { %3547 = vrcp.f32 %v1747_v29 }
0x15bd   :  { %v3548_v9 = vpop.eup %3547 }
0x1624   :  { %v1760_v6 = vpop.permute.xlu1 %1759 }
0x1625   :  { %v1762_v7 = vadd.f32 %v1760_v6, %v1756_v58 }
0x1627   :  { %3549 = vtanh.f32 %v1762_v7  ;;  %v1863_v32 = vrot.slane %v1762_v7, 4 }
0x1631   :  { %v3550_v34 = vpop.eup %3549 }
0x1632   :  { %v4342_v10 = vmul.f32 %v3550_v34, %v3548_v9 }
0x1634   :  { %1766 = vrot.lane.b32.xlu0 %v4342_v10, %s3706_s4 }
0x16a6   :  { %v1767_v11 = vpop.permute.xlu0 %1766 }
0x16a7   :  { %2868 = vmatmul.mubr.msk.f32.vlgmr.msra.gmra.mrb[18].mxu0 %vm366_vm7, %v1767_v11 }
0x16a8   :  { %3317 = vmatpush1.bf16.msra.mxu0 %v4200_v33  ;;  %2055 = vmatprep.mubr.f32.mxu0 %v3705_v53 }
0x16a9   :  { %3319 = vmatprep.subr.bf16.mxu0 %v4205_v54 }
0x16ac   :  { %3321 = vmatpush1.bf16.msra.mxu0 %v4207_v38 }
0x16ad   :  { %3323 = vmatprep.subr.bf16.mxu0 %v4211_v5 }
0x16b0   :  { %3325 = vmatpush1.bf16.msra.mxu0 %v4213_v59 }
0x16b1   :  { %3327 = vmatprep.subr.bf16.mxu0 %v4221_v50 }
0x16b4   :  { %3329 = vmatpush1.bf16.msra.mxu0 %v4224_v56 }
0x16b5   :  { %3347 = vmatprep.subr.bf16.mxu0 %v4198_v28 }
0x177a   :  { %v1836_v15 = vpop.f32.mrb[18].mxu0 }
0x177b   :  { %v1843_v16 = vrot.slane %v1836_v15, 4  ;;  %v1838_v18 = vpop.f32.mrb[19].mxu0 }
0x177c   :  { %v1844_v21 = vrot.slane %v1838_v18, 4 }
0x177d   :  { %v1847_v19 = vadd.f32 %v1843_v16, %v4289_v45 }
0x177e   :  { %v1848_v22 = vadd.f32 %v1844_v21, %v4293_v49 }
0x177f   :  { %v2869_v20 = vmul.f32 -1.442695, %v1847_v19 }
0x1780   :  { %v2870_v28 = vmul.f32 -1.442695, %v1848_v22 }
0x1781   :  { %3551 = vpow2.f32 %v2869_v20 }
0x1782   :  { %3553 = vtanh.f32 %v1848_v22 }
0x178b   :  { %v3552_v25 = vpop.eup %3551 }
0x178c   :  { %v1855_v27 = vadd.f32 1.0, %v3552_v25  ;;  %v3554_v31 = vpop.eup %3553 }
0x178e   :  { %3555 = vrcp.f32 %v1855_v27 }
0x178f   :  { %3557 = vpow2.f32 %v2870_v28 }
0x1798   :  { %v3556_v35 = vpop.eup %3555 }
0x1799   :  { %v1866_v36 = vmul.f32 %v3556_v35, %v3554_v31  ;;  %v1865_v37 = vmul.f32 %v3556_v35, %v1863_v32  ;;  %v3558_v57 = vpop.eup %3557 }
0x179a   :  { %v1856_v45 = vadd.f32 1.0, %v3558_v57 }
0x179b   :  { %1868 = vrot.lane.b32.xlu1 %v1866_v36, %s3706_s4 }
0x179c   :  { %3559 = vrcp.f32 %v1856_v45 }
0x17a6   :  { %v3560_v49 = vpop.eup %3559 }
0x180d   :  { %v1869_v60 = vpop.permute.xlu1 %1868 }
0x180e   :  { %v1871_v63 = vadd.f32 %v1869_v60, %v1865_v37 }
0x1810   :  { %3561 = vtanh.f32 %v1871_v63  ;;  %v1975_v26 = vrot.slane %v1871_v63, 4 }
0x181a   :  { %v3562_v2 = vpop.eup %3561 }
0x181b   :  { %v4359_v40 = vmul.f32 %v3562_v2, %v3560_v49 }
0x181d   :  { %v1883_v14 = vrot.slane %v4359_v40, 4 }
0x181f   :  { %1884 = vrot.lane.b32.xlu0 %v1883_v14, %s3706_s4 }
0x1891   :  { %v1885_v55 = vpop.permute.xlu0 %1884 }
0x1892   :  { %2871 = vmatmul.mubr.msk.f32.vlgmr.msra.gmra.mrb[24].mxu1 %vm366_vm7, %v1885_v55 }
0x1893   :  { %3333 = vmatpush1.bf16.msra.mxu1 %v4200_v33  ;;  %2173 = vmatprep.mubr.f32.mxu1 %v3705_v53 }
0x1894   :  { %3335 = vmatprep.subr.bf16.mxu1 %v4205_v54 }
0x1897   :  { %3337 = vmatpush1.bf16.msra.mxu1 %v4207_v38 }
0x1898   :  { %3339 = vmatprep.subr.bf16.mxu1 %v4211_v5 }
0x189b   :  { %3341 = vmatpush1.bf16.msra.mxu1 %v4213_v59 }
0x189c   :  { %3343 = vmatprep.subr.bf16.mxu1 %v4221_v50 }
0x189f   :  { %3345 = vmatpush1.bf16.msra.mxu1 %v4224_v56 }
0x1965   :  { %v1954_v8 = vpop.f32.mrb[24].mxu1 }
0x1966   :  { %v1959_v46 = vadd.f32 %v1954_v8, %v4281_v41  ;;  %v1956_v43 = vpop.f32.mrb[25].mxu1 }
0x1967   :  { %v1960_v24 = vadd.f32 %v1956_v43, %v4285_v17 }
0x1968   :  { %v2872_v52 = vmul.f32 -1.442695, %v1959_v46 }
0x1969   :  { %v2873_v47 = vmul.f32 -1.442695, %v1960_v24 }
0x196a   :  { %3563 = vpow2.f32 %v2872_v52 }
0x196b   :  { %3565 = vtanh.f32 %v1960_v24 }
0x1974   :  { %v3564_v3 = vpop.eup %3563 }
0x1975   :  { %v1967_v30 = vadd.f32 1.0, %v3564_v3  ;;  %v3566_v48 = vpop.eup %3565 }
0x1977   :  { %3567 = vrcp.f32 %v1967_v30 }
0x1978   :  { %3569 = vpow2.f32 %v2873_v47  ;;  %v2316_v47 = vsel %vm1237_vm8, %v4308_v12, %v4323_v44 }
0x1981   :  { %v3568_v62 = vpop.eup %3567 }
0x1982   :  { %v1978_v23 = vmul.f32 %v3568_v62, %v3566_v48  ;;  %v1977_v0 = vmul.f32 %v3568_v62, %v1975_v26  ;;  %v3570_v58 = vpop.eup %3569 }
0x1983   :  { %v1968_v61 = vadd.f32 1.0, %v3570_v58 }
0x1984   :  { %1980 = vrot.lane.b32.xlu1 %v1978_v23, %s3706_s4 }
0x1985   :  { %3571 = vrcp.f32 %v1968_v61 }
0x198f   :  { %v3572_v6 = vpop.eup %3571 }
0x19f6   :  { %v1981_v4 = vpop.permute.xlu1 %1980 }
0x19f7   :  { %v1983_v29 = vadd.f32 %v1981_v4, %v1977_v0 }
0x19f9   :  { %3573 = vtanh.f32 %v1983_v29 }
0x1a03   :  { %v3574_v7 = vpop.eup %3573 }
0x1a04   :  { %v4377_v9 = vmul.f32 %v3574_v7, %v3572_v6 }
0x1a06   :  { %1987 = vrot.lane.b32.xlu0 %v4377_v9, %s3706_s4 }
0x1a78   :  { %v1988_v34 = vpop.permute.xlu0 %1987 }
0x1a79   :  { %2874 = vmatmul.mubr.msk.f32.vlgmr.msra.gmra.mrb[20].mxu0 %vm366_vm7, %v1988_v34 }
0x1a7a   :  { %3349 = vmatpush1.bf16.msra.mxu0 %v4200_v33  ;;  %2276 = vmatprep.mubr.f32.mxu0 %v3705_v53 }
0x1a7b   :  { %3351 = vmatprep.subr.bf16.mxu0 %v4205_v54 }
0x1a7e   :  { %3353 = vmatpush1.bf16.msra.mxu0 %v4207_v38 }
0x1a7f   :  { %3355 = vmatprep.subr.bf16.mxu0 %v4211_v5 }
0x1a82   :  { %3357 = vmatpush1.bf16.msra.mxu0 %v4213_v59  ;;  %v2084_v59 = vrot.slane %v1983_v29, 4 }
0x1a83   :  { %3359 = vmatprep.subr.bf16.mxu0 %v4221_v50 }
0x1a86   :  { %3361 = vmatpush1.bf16.msra.mxu0 %v4224_v56 }
0x1b4c   :  { %v2057_v11 = vpop.f32.mrb[20].mxu0 }
0x1b4d   :  { %v2064_v15 = vrot.slane %v2057_v11, 4  ;;  %v2059_v16 = vpop.f32.mrb[21].mxu0 }
0x1b4e   :  { %v2065_v19 = vrot.slane %v2059_v16, 4 }
0x1b4f   :  { %v2068_v18 = vadd.f32 %v2064_v15, %v4281_v41 }
0x1b50   :  { %v2069_v54 = vadd.f32 %v2065_v19, %v4285_v17 }
0x1b51   :  { %v2875_v33 = vmul.f32 -1.442695, %v2068_v18 }
0x1b52   :  { %v2876_v56 = vmul.f32 -1.442695, %v2069_v54 }
0x1b53   :  { %3575 = vpow2.f32 %v2875_v33 }
0x1b54   :  { %3577 = vtanh.f32 %v2069_v54 }
0x1b5d   :  { %v3576_v20 = vpop.eup %3575 }
0x1b5e   :  { %v2076_v38 = vadd.f32 1.0, %v3576_v20  ;;  %v3578_v5 = vpop.eup %3577 }
0x1b60   :  { %3579 = vrcp.f32 %v2076_v38  ;;  %v2326_v38 = vrot.slane %v4377_v9, 4 }
0x1b61   :  { %3581 = vpow2.f32 %v2876_v56 }
0x1b6a   :  { %v3580_v21 = vpop.eup %3579 }
0x1b6b   :  { %v2087_v50 = vmul.f32 %v3580_v21, %v3578_v5  ;;  %v2086_v22 = vmul.f32 %v3580_v21, %v2084_v59  ;;  %v3582_v25 = vpop.eup %3581 }
0x1b6c   :  { %v2077_v41 = vadd.f32 1.0, %v3582_v25 }
0x1b6d   :  { %2089 = vrot.lane.b32.xlu1 %v2087_v50, %s3706_s4 }
0x1b6e   :  { %3583 = vrcp.f32 %v2077_v41 }
0x1b78   :  { %v3584_v17 = vpop.eup %3583 }
0x1bdf   :  { %v2090_v27 = vpop.permute.xlu1 %2089 }
0x1be0   :  { %v2092_v31 = vadd.f32 %v2090_v27, %v2086_v22 }
0x1be2   :  { %3585 = vtanh.f32 %v2092_v31  ;;  %v2196_v8 = vrot.slane %v2092_v31, 4 }
0x1bec   :  { %v3586_v32 = vpop.eup %3585 }
0x1bed   :  { %v4393_v35 = vmul.f32 %v3586_v32, %v3584_v17 }
0x1bef   :  { %v2104_v36 = vrot.slane %v4393_v35, 4 }
0x1bf1   :  { %2105 = vrot.lane.b32.xlu0 %v2104_v36, %s3706_s4 }
0x1c63   :  { %v2106_v37 = vpop.permute.xlu0 %2105 }
0x1c64   :  { %2877 = vmatmul.mubr.msk.f32.vlgmr.msra.gmra.mrb[26].mxu1 %vm366_vm7, %v2106_v37 }
0x1d37   :  { %v2175_v28 = vpop.f32.mrb[26].mxu1 }
0x1d38   :  { %v2180_v57 = vadd.f32 %v2175_v28, %v4297_v51  ;;  %v2177_v45 = vpop.f32.mrb[27].mxu1  ;;  %v2318_v28 = vsel %vm1237_vm8, %v4377_v9, %v4393_v35 }
0x1d39   :  { %v2181_v63 = vadd.f32 %v2177_v45, %v4301_v1 }
0x1d3a   :  { %v2878_v60 = vmul.f32 -1.442695, %v2180_v57  ;;  %v2329_v57 = vrot.slane %v4342_v10, 4 }
0x1d3b   :  { %v2879_v24 = vmul.f32 -1.442695, %v2181_v63 }
0x1d3c   :  { %3587 = vpow2.f32 %v2878_v60 }
0x1d3d   :  { %3589 = vtanh.f32 %v2181_v63 }
0x1d46   :  { %v3588_v49 = vpop.eup %3587 }
0x1d47   :  { %v2188_v2 = vadd.f32 1.0, %v3588_v49  ;;  %v3590_v55 = vpop.eup %3589 }
0x1d49   :  { %3591 = vrcp.f32 %v2188_v2 }
0x1d4a   :  { %3593 = vpow2.f32 %v2879_v24  ;;  %v2480_v24 = vand.u32 3, %v3983_v13 }
0x1d53   :  { %v3592_v46 = vpop.eup %3591 }
0x1d54   :  { %v2199_v43 = vmul.f32 %v3592_v46, %v3590_v55  ;;  %v2198_v52 = vmul.f32 %v3592_v46, %v2196_v8  ;;  %v3594_v3 = vpop.eup %3593  ;;  %v2473_v46 = vadd.s32 8, %v3983_v13 }
0x1d55   :  { %v2189_v30 = vadd.f32 1.0, %v3594_v3  ;;  %v2474_v3 = vadd.s32 16, %v3983_v13 }
0x1d56   :  { %2201 = vrot.lane.b32.xlu1 %v2199_v43, %s3706_s4  ;;  %v2487_v43 = vand.u32 3, %v2473_v46  ;;  %v2717_v46 = vld [vmem:[%s4536_s8 + $0x38] sm:$0xff] }
0x1d57   :  { %3595 = vrcp.f32 %v2189_v30  ;;  %v2475_v30 = vadd.s32 24, %v3983_v13 }
0x1d61   :  { %v3596_v62 = vpop.eup %3595 }
0x1dc8   :  { %v2202_v48 = vpop.permute.xlu1 %2201 }
0x1dc9   :  { %v2204_v26 = vadd.f32 %v2202_v48, %v2198_v52  ;;  %v2528_v52 = vand.u32 3, %v3874_v42  ;;  %v2494_v48 = vand.u32 3, %v2474_v3 }
0x1dcb   :  { %3597 = vtanh.f32 %v2204_v26  ;;  %v2305_v33 = vrot.slane %v2204_v26, 4  ;;  %vm2537_vm10 = vcmp.eq.s32.totalorder %v2487_v43, %v2528_v52  ;;  %vm2536_vm11 = vcmp.eq.s32.totalorder %v2480_v24, %v2528_v52  ;;  %v2719_v24 = vld [vmem:[%s4536_s8 + $0x48] sm:$0xff] }
0x1dcc   :  { %vm2538_vm12 = vcmp.eq.s32.totalorder %v2494_v48, %v2528_v52  ;;  %v2721_v48 = vld [vmem:[%s4536_s8 + $0x58] sm:$0xff] }
0x1dd5   :  { %v3598_v23 = vpop.eup %3597 }
0x1dd6   :  { %v2206_v0 = vmul.f32 %v3598_v23, %v3596_v62 }
0x1dd8   :  { %2208 = vrot.lane.b32.xlu0 %v2206_v0, %s3706_s4  ;;  %v2323_v17 = vrot.slane %v2206_v0, 4 }
0x1ddc   :  { %2342 = vrot.lane.b32.xlu0 %v2316_v47, %s3706_s4 }
0x1e4a   :  { %v2209_v58 = vpop.permute.xlu0 %2208 }
0x1e4b   :  { %2880 = vmatmul.mubr.msk.f32.vlgmr.msra.gmra.mrb[22].mxu0 %vm366_vm7, %v2209_v58 }
0x1e4e   :  { %v2343_v44 = vpop.permute.xlu0 %2342 }
0x1f1e   :  { %v2278_v61 = vpop.f32.mrb[22].mxu0 }
0x1f1f   :  { %v2285_v4 = vrot.slane %v2278_v61, 4  ;;  %v2280_v29 = vpop.f32.mrb[23].mxu0 }
0x1f20   :  { %v2286_v34 = vrot.slane %v2280_v29, 4 }
0x1f21   :  { %v2289_v6 = vadd.f32 %v2285_v4, %v4297_v51  ;;  %v2317_v51 = vsel %vm1237_vm8, %v4342_v10, %v4359_v40 }
0x1f22   :  { %v2290_v11 = vadd.f32 %v2286_v34, %v4301_v1  ;;  %v2335_v1 = vsel %vm1237_vm8, %v2104_v36, %v2326_v38  ;;  %v2332_v36 = vrot.slane %v4308_v12, 4  ;;  %v2336_v12 = vsel %vm1237_vm8, %v1883_v14, %v2329_v57 }
0x1f23   :  { %v2881_v7 = vmul.f32 -1.442695, %v2289_v6 }
0x1f24   :  { %v2882_v5 = vmul.f32 -1.442695, %v2290_v11  ;;  %v2337_v37 = vsel %vm1237_vm8, %v1662_v39, %v2332_v36 }
0x1f25   :  { %3599 = vpow2.f32 %v2881_v7 }
0x1f26   :  { %3601 = vtanh.f32 %v2290_v11 }
0x1f2f   :  { %v3600_v15 = vpop.eup %3599 }
0x1f30   :  { %v2297_v16 = vadd.f32 1.0, %v3600_v15  ;;  %v3602_v18 = vpop.eup %3601 }
0x1f32   :  { %3603 = vrcp.f32 %v2297_v16 }
0x1f33   :  { %3605 = vpow2.f32 %v2882_v5 }
0x1f3c   :  { %v3604_v19 = vpop.eup %3603 }
0x1f3d   :  { %v2308_v54 = vmul.f32 %v3604_v19, %v3602_v18  ;;  %v2307_v20 = vmul.f32 %v3604_v19, %v2305_v33  ;;  %v3606_v59 = vpop.eup %3605 }
0x1f3e   :  { %v2298_v21 = vadd.f32 1.0, %v3606_v59 }
0x1f3f   :  { %2310 = vrot.lane.b32.xlu1 %v2308_v54, %s3706_s4 }
0x1f40   :  { %3607 = vrcp.f32 %v2298_v21 }
0x1f43   :  { %2344 = vrot.lane.b32.xlu1 %v2317_v51, %s3706_s4 }
0x1f47   :  { %2360 = vrot.lane.b32.xlu1 %v2335_v1, %s3706_s4 }
0x1f4a   :  { %v3608_v56 = vpop.eup %3607 }
0x1fb1   :  { %v2311_v50 = vpop.permute.xlu1 %2310 }
0x1fb2   :  { %v2313_v22 = vadd.f32 %v2311_v50, %v2307_v20 }
0x1fb4   :  { %3609 = vtanh.f32 %v2313_v22 }
0x1fb5   :  { %v2345_v45 = vpop.permute.xlu1 %2344 }
0x1fb9   :  { %v2361_v60 = vpop.permute.xlu1 %2360 }
0x1fba   :  { %v2371_v49 = vsel %vm240_vm4, %v2345_v45, %v2361_v60 }
0x1fbe   :  { %v3610_v25 = vpop.eup %3609 }
0x1fbf   :  { %v2315_v41 = vmul.f32 %v3610_v25, %v3608_v56 }
0x1fc1   :  { %v2319_v27 = vsel %vm1237_vm8, %v2206_v0, %v2315_v41  ;;  %v2321_v31 = vrot.slane %v2315_v41, 4  ;;  %v2501_v0 = vand.u32 3, %v2475_v30  ;;  %v2720_v30 = vld [vmem:[%s4536_s8 + $0x50] sm:$0xff] }
0x1fc2   :  { %2348 = vrot.lane.b32.xlu1 %v2319_v27, %s3706_s4 }
0x1fc3   :  { %v2334_v32 = vsel %vm1237_vm8, %v2321_v31, %v2323_v17  ;;  %vm2539_vm13 = vcmp.eq.s32.totalorder %v2501_v0, %v2528_v52  ;;  %v2718_v52 = vld [vmem:[%s4536_s8 + $0x40] sm:$0xff] }
0x1fc4   :  { %2358 = vrot.lane.b32.xlu0 %v2334_v32, %s3706_s4  ;;  %v3395_v3 = vpack.c.bf16 %v2719_v24, %v2718_v52 }
0x1fc6   :  { %2364 = vrot.lane.b32.xlu1 %v2337_v37, %s3706_s4 }
0x1fc8   :  { %2346 = vrot.lane.b32.xlu0 %v2318_v28, %s3706_s4 }
0x1fcc   :  { %2362 = vrot.lane.b32.xlu0 %v2336_v12, %s3706_s4 }
0x2034   :  { %v2349_v39 = vpop.permute.xlu1 %2348 }
0x2036   :  { %v2359_v63 = vpop.permute.xlu0 %2358 }
0x2037   :  { %v2370_v2 = vsel %vm240_vm4, %v2343_v44, %v2359_v63  ;;  %v2711_v63 = vld [vmem:[%s4536_s8 + $0x8] sm:$0xff] }
0x2038   :  { %v3362_v9 = vpack.c.bf16 %v2371_v49, %v2370_v2  ;;  %2995 = vmatprep.mubr.msk.f32.mxu1 %vm366_vm7, %v2370_v2  ;;  %v2365_v40 = vpop.permute.xlu1 %2364  ;;  %v3707_v2 = vmov 0.0|0.0  }
0x2039   :  { %v2373_v35 = vsel %vm240_vm4, %v2349_v39, %v2365_v40  ;;  %v2710_v39 = vld [vmem:[%s4536_s8] sm:$0xff] }
0x203a   :  { %v2347_v10 = vpop.permute.xlu0 %2346  ;;  %3364 = vmatprep.subr.msk.bf16.mxu1 %vm3363_vm9, %v3362_v9  ;;  %3375 = vmatprep.subr.bf16.mxu0 %v3362_v9 }
0x203b   :  { %3367 = vmatpush3.bf16.xpose.msk.msra.mxu1 %vm3363_vm9, %v3362_v9  ;;  %3377 = vmatpush3.bf16.msra.mxu0 %v3362_v9  ;;  %v3383_v9 = vpack.c.bf16 %v2711_v63, %v2710_v39 }
0x203e   :  { %v2363_v14 = vpop.permute.xlu0 %2362 }
0x203f   :  { %v2372_v55 = vsel %vm240_vm4, %v2347_v10, %v2363_v14  ;;  %v2713_v10 = vld [vmem:[%s4536_s8 + $0x18] sm:$0xff]  ;;  %v2714_v14 = vld [vmem:[%s4536_s8 + $0x20] sm:$0xff] }
0x2040   :  { %v3368_v8 = vpack.c.bf16 %v2373_v35, %v2372_v55 }
0x2042   :  { %3370 = vmatprep.subr.msk.bf16.mxu1 %vm3363_vm9, %v3368_v8  ;;  %3379 = vmatprep.subr.bf16.mxu0 %v3368_v8 }
0x2043   :  { %3373 = vmatpush3.bf16.xpose.msk.msra.mxu1 %vm3363_vm9, %v3368_v8  ;;  %3381 = vmatpush3.bf16.msra.mxu0 %v3368_v8  ;;  %v2716_v8 = vld [vmem:[%s4536_s8 + $0x30] sm:$0xff] }
0x2044   :  { %3382 = vmatprep.subr.bf16.mxu0 %v3707_v2  ;;  %v3392_v43 = vpack.c.bf16 %v2717_v46, %v2716_v8 }
0x204a   :  { %2996 = vmatmul.mubr.msk.f32.vlgmr.msra.gmra.mrb[28].mxu1 %vm366_vm7, %v2371_v49  ;;  %v2712_v49 = vld [vmem:[%s4536_s8 + $0x10] sm:$0xff] }
0x204b   :  { %2998 = vmatprep.mubr.msk.f32.mxu1 %vm366_vm7, %v2372_v55  ;;  %v3386_v40 = vpack.c.bf16 %v2713_v10, %v2712_v49 }
0x204e   :  { %2999 = vmatmul.mubr.msk.f32.gmra.mrb[30].mxu1 %vm366_vm7, %v2373_v35  ;;  %v2715_v35 = vld [vmem:[%s4536_s8 + $0x28] sm:$0xff] }
0x204f   :  { %v3389_v55 = vpack.c.bf16 %v2715_v35, %v2714_v14 }
0x211d   :  { %v2997_v26 = vpop.f32.mrb[28].mxu1 }
0x211e   :  { %v2541_v62 = vsel %vm2537_vm10, %v2997_v26, -1e+30  ;;  %v2452_v23 = vpop.f32.mrb[29].mxu1  ;;  %v3398_v26 = vpack.c.bf16 %v2721_v48, %v2720_v30 }
0x211f   :  { %v2540_v47 = vsel %vm2536_vm11, %v2452_v23, -1e+30  ;;  %v2547_v58 = vsel %vm240_vm4, %v2541_v62, -inf  ;;  %v2723_v23 = vld [vmem:[%s4536_s8 + $0x68] sm:$0xff] }
0x2120   :  { %2548 = vmax.xlane.f32.xlu1 %v2547_v58  ;;  %v2544_v61 = vsel %vm240_vm4, %v2540_v47, -inf  ;;  %v2725_v58 = vld [vmem:[%s4536_s8 + $0x78] sm:$0xff] }
0x2121   :  { %2545 = vmax.xlane.f32.xlu0 %v2544_v61  ;;  %v3000_v42 = vpop.f32.mrb[30].mxu1 }
0x2122   :  { %v2462_v4 = vpop.f32.mrb[31].mxu1  ;;  %v2543_v6 = vsel %vm2539_vm13, %v3000_v42, -1e+30 }
0x2123   :  { %v2542_v29 = vsel %vm2538_vm12, %v2462_v4, -1e+30  ;;  %v2553_v7 = vsel %vm240_vm4, %v2543_v6, -inf }
0x2124   :  { %v2550_v13 = vsel %vm240_vm4, %v2542_v29, -inf }
0x2125   :  { %2551 = vmax.xlane.f32.xlu0 %v2550_v13 }
0x2129   :  { %2554 = vmax.xlane.f32.xlu0 %v2553_v7 }
0x21ad   :  { %v2549_v34 = vpop.xlane.xlu1 %2548 }
0x21ae   :  { %v2557_v11 = vsub.f32 %v2541_v62, %v2549_v34  ;;  %v2546_v15 = vpop.xlane.xlu0 %2545  ;;  %v2722_v62 = vld [vmem:[%s4536_s8 + $0x60] sm:$0xff] }
0x21af   :  { %v2556_v16 = vsub.f32 %v2540_v47, %v2546_v15  ;;  %v3401_v0 = vpack.c.bf16 %v2723_v23, %v2722_v62  ;;  %v2724_v47 = vld [vmem:[%s4536_s8 + $0x70] sm:$0xff] }
0x21b0   :  { %v2562_v18 = vmul.f32 1.442695, %v2557_v11  ;;  %v3404_v61 = vpack.c.bf16 %v2725_v58, %v2724_v47 }
0x21b1   :  { %v2560_v33 = vmul.f32 1.442695, %v2556_v16 }
0x21b2   :  { %3611 = vpow2.f32 %v2562_v18  ;;  %v2552_v19 = vpop.xlane.xlu0 %2551 }
0x21b3   :  { %3613 = vpow2.f32 %v2560_v33  ;;  %v2558_v54 = vsub.f32 %v2542_v29, %v2552_v19 }
0x21b5   :  { %v2564_v20 = vmul.f32 1.442695, %v2558_v54 }
0x21b6   :  { %v2555_v51 = vpop.xlane.xlu0 %2554 }
0x21b7   :  { %3615 = vpow2.f32 %v2564_v20  ;;  %v2559_v38 = vsub.f32 %v2543_v6, %v2555_v51 }
0x21b9   :  { %v2566_v1 = vmul.f32 1.442695, %v2559_v38 }
0x21bb   :  { %3617 = vpow2.f32 %v2566_v1 }
0x21bc   :  { %v3612_v5 = vpop.eup %3611 }
0x21bd   :  { %v3614_v59 = vpop.eup %3613  ;;  %v2571_v21 = vsel %vm240_vm4, %v3612_v5, 0.0 }
0x21be   :  { %2572 = vadd.xlane.f32.xlu0 %v2571_v21  ;;  %v2568_v50 = vsel %vm240_vm4, %v3614_v59, 0.0 }
0x21bf   :  { %2569 = vadd.xlane.f32.xlu1 %v2568_v50 }
0x21c1   :  { %v3616_v22 = vpop.eup %3615 }
0x21c2   :  { %v2574_v56 = vsel %vm240_vm4, %v3616_v22, 0.0 }
0x21c3   :  { %2575 = vadd.xlane.f32.xlu1 %v2574_v56 }
0x21c5   :  { %v3618_v25 = vpop.eup %3617 }
0x21c6   :  { %v2577_v41 = vsel %vm240_vm4, %v3618_v25, 0.0 }
0x21c7   :  { %2578 = vadd.xlane.f32.xlu0 %v2577_v41 }
0x224b   :  { %v2573_v27 = vpop.xlane.xlu0 %2572 }
0x224c   :  { %3619 = vrcp.f32 %v2573_v27  ;;  %v2570_v31 = vpop.xlane.xlu1 %2569 }
0x224d   :  { %3621 = vrcp.f32 %v2570_v31 }
0x2250   :  { %v2576_v17 = vpop.xlane.xlu1 %2575 }
0x2251   :  { %3623 = vrcp.f32 %v2576_v17 }
0x2254   :  { %v2579_v32 = vpop.xlane.xlu0 %2578 }
0x2255   :  { %3625 = vrcp.f32 %v2579_v32 }
0x2256   :  { %v3620_v36 = vpop.eup %3619 }
0x2257   :  { %v3622_v37 = vpop.eup %3621  ;;  %v2583_v57 = vmul.f32 %v3620_v36, %v3612_v5  ;;  %v2895_v5 = vld [vmem:[%s4537_s9] ss:$0 sm:$0xff] }
0x2258   :  { %v2581_v28 = vmul.f32 %v3622_v37, %v3614_v59 }
0x225a   :  { %3009 = vmatprep.mubr.msk.f32.mxu0 %vm240_vm4, %v2581_v28 }
0x225b   :  { %v3624_v12 = vpop.eup %3623  ;;  %3010 = vmatmul.mubr.msk.f32.vlgmr.msra.gmra.mrb[24].mxu0 %vm240_vm4, %v2583_v57 }
0x225c   :  { %v2585_v45 = vmul.f32 %v3624_v12, %v3616_v22  ;;  %3384 = vmatpush3.bf16.msra.mxu0 %v3383_v9 }
0x225d   :  { %3385 = vmatprep.subr.bf16.mxu0 %v3707_v2 }
0x225e   :  { %3012 = vmatprep.mubr.msk.f32.mxu0 %vm240_vm4, %v2585_v45 }
0x225f   :  { %v3626_v44 = vpop.eup %3625 }
0x2260   :  { %v2587_v60 = vmul.f32 %v3626_v44, %v3618_v25  ;;  %3387 = vmatpush3.bf16.msra.mxu0 %v3386_v40 }
0x2261   :  { %3388 = vmatprep.subr.bf16.mxu0 %v3707_v2 }
0x2262   :  { %3013 = vmatmul.mubr.msk.f32.gmra.mrb[26].mxu0 %vm240_vm4, %v2587_v60 }
0x2263   :  { %3047 = vmatprep.mubr.msk.f32.mxu0 %vm3708_vm14, %v3705_v53 }
0x2264   :  { %3390 = vmatpush3.bf16.msra.mxu0 %v3389_v55 }
0x2265   :  { %3391 = vmatprep.subr.bf16.mxu0 %v3707_v2 }
0x2268   :  { %3393 = vmatpush3.bf16.msra.mxu0 %v3392_v43 }
0x2269   :  { %3394 = vmatprep.subr.bf16.mxu0 %v3707_v2 }
0x226c   :  { %3396 = vmatpush3.bf16.msra.mxu0 %v3395_v3 }
0x226d   :  { %3397 = vmatprep.subr.bf16.mxu0 %v3707_v2 }
0x2270   :  { %3399 = vmatpush3.bf16.msra.mxu0 %v3398_v26 }
0x2271   :  { %3400 = vmatprep.subr.bf16.mxu0 %v3707_v2 }
0x2274   :  { %3402 = vmatpush3.bf16.msra.mxu0 %v3401_v0 }
0x2275   :  { %3403 = vmatprep.subr.bf16.mxu0 %v3707_v2 }
0x2278   :  { %3405 = vmatpush3.bf16.msra.mxu0 %v3404_v61 }
0x232e   :  { %v3011_v42 = vpop.f32.mrb[24].mxu0 }
0x232f   :  { %v2666_v4 = vpop.f32.mrb[25].mxu0  ;;  %v2691_v6 = vrot.slane %v3011_v42, 4 }
0x2330   :  { %v2686_v29 = vrot.slane %v2666_v4, 4 }
0x2332   :  { %v2688_v13 = vmax.f32 %v2666_v4, %v2686_v29 }
0x2334   :  { %v2689_v7 = vmax.f32 %v2688_v13, %v3011_v42 }
0x2335   :  { %v3014_v34 = vpop.f32.mrb[26].mxu0 }
0x2336   :  { %v2676_v11 = vpop.f32.mrb[27].mxu0  ;;  %v2693_v15 = vmax.f32 %v2689_v7, %v2691_v6  ;;  %v2701_v19 = vrot.slane %v3014_v34, 4 }
0x2337   :  { %v2696_v16 = vrot.slane %v2676_v11, 4 }
0x2338   :  { %v2694_v18 = vmax.f32 %v2693_v15, %v2676_v11 }
0x233a   :  { %v2698_v33 = vmax.f32 %v2694_v18, %v2696_v16 }
0x233c   :  { %v2699_v54 = vmax.f32 %v2698_v33, %v3014_v34 }
0x233e   :  { %v2703_v20 = vmax.f32 %v2699_v54, %v2701_v19 }
0x2340   :  { %v2705_v51 = vrot.slane %v2703_v20, 2 }
0x2342   :  { %2706 = vrot.lane.b32.xlu1 %v2705_v51, %s3706_s4 }
0x23b4   :  { %v2707_v38 = vpop.permute.xlu1 %2706 }
0x23b5   :  { %v2709_v1 = vsel %vm366_vm7, %v2703_v20, %v2707_v38 }
0x23b6   :  { %3048 = vmatmul.mubr.f32.vlgmr.msra.gmra.mrb[28].mxu0 %v2709_v1 }
0x2489   :  { %v2799_v53 = vpop.f32.mrb[28].mxu0 }
0x248a   :  { %v2800_v59 = vadd.f32 %v2895_v5, %v2799_v53  ;;  %v3049_v21 = vpop.f32.mrb[29].mxu0 }
0x248c   :  { %2804 = vst.msk [vmem:[#allocation7] sm:$0x3] %vm2803_vm15, %v2800_v59 }
0x248d   :  { %3682 = shalt.err (!%p3679_p6)
}
0x248e   :  { %s3683_s24 = scalar_lea.hbm %s4538_s10, 32 }
0x248f   :  { %p3684_p7 = scmp.ne.s32.totalorder %s4538_s10, %s3683_s24  ;;  %p3687_p8 = scmp.lt.u32.totalorder %s3683_s24, %s4538_s10 }
0x2491   :  { %p3689_p9 = pnand %p3687_p8, %p3684_p7 }
0x2493   :  { %3692 = shalt.err (!%p3689_p9)
}
0x2494   :  { %2814 = dma.vmem_to_hbm [thread:$0]  %s2812_s22, 32, %s4538_s10, [#allocation4]  }
0x2495   :  { %3697 = dma.done.wait [#allocation4], 32  }
0x2496   :  { %3698 = vsyncadd [#allocation4], 4294967264 }
0x2497   :  { %2818 = vsyncpa [#allocation3], 1 }
0x2498   :  { %2819 = vsyncpa [#allocation6], 1 }
0x2499   :  { %2820 = vsyncpa [#allocation4], 1 }

</bundles_post_ra>
